<compile_context>
chip_gen: v7x
topology: tpu7x:2x2x1
jax: 0.10.0
libtpu: 0.0.40
codegen_flags: <defaults>
</compile_context>

<pallas_src>
import jax
import jax.numpy as jnp
import numpy as np
from jax.experimental import pallas as pl
from jax.experimental.pallas import tpu as pltpu


def _pair(v):
    if isinstance(v, (tuple, list)):
        a, b = v
        return int(a), int(b)
    return int(v), int(v)


def _decompose_filter(filt_np):
    """Return (col_taps, row_taps) if the 2d filter is rank-1, else (None, None)."""
    u, s, vt = np.linalg.svd(filt_np.astype(np.float64))
    if s.shape[0] > 1 and s[1] > 1e-6 * max(float(s[0]), 1e-30):
        return None, None
    col = u[:, 0] * float(s[0])
    row = vt[0, :]
    return col, row


def _build_blur_matrices(filt_np, W, Wm, Wo, sw):
    """Fold horizontal blur taps + zero 'same' padding + stride-sw decimation into
    small (Wo, W) matrices.  Columns >= Wm (max-pool wrap garbage) get zero taps."""
    fh, fw = filt_np.shape
    pw = fw // 2
    col, row = _decompose_filter(filt_np)
    if col is not None:                       # separable (default filter) path
        taps = np.zeros((1, Wo, W), np.float32)
        for o in range(Wo):
            for kj in range(fw):
                w = sw * o - pw + kj
                if 0 <= w < Wm:
                    taps[0, o, w] += row[kj]
        return taps, tuple(float(c) for c in col)
    taps = np.zeros((fh, Wo, W), np.float32)  # generic (non-separable) fallback
    for ki in range(fh):
        for o in range(Wo):
            for kj in range(fw):
                w = sw * o - pw + kj
                if 0 <= w < Wm:
                    taps[ki, o, w] += float(filt_np[ki, kj])
    return taps, None


def _make_kernel(H, W, kh, kw, fh, sh, Hm, Wm, Ho, Wo, bt, col_taps, oh_chunk):
    """Kernel over one (H, W, bt) block; writes the (Ho, Wo, bt) block directly."""
    ph = fh // 2

    def kernel(x_ref, mw_ref, out_ref, cm_ref):
        # Hoisted constants (built once per grid step).
        col_ok = jax.lax.broadcasted_iota(jnp.int32, (W, bt), 0) < Wm
        zero_row = jnp.zeros((W, bt), jnp.float32)

        # ---- pass 1: kw-wide column max of every input row, computed ONCE into
        # a VMEM scratch; wrap-garbage columns (w >= Wm) are zeroed (Inf/NaN safe).
        # Max-pool stays in the input dtype (bf16-friendly on v6e/v7x).
        # TODO(synk): for very large H, switch this unrolled loop to lax.fori_loop.
        for r in range(H):
            row = x_ref[r]                                   # (W, bt)
            m = row
            for dj in range(1, kw):
                m = jnp.maximum(m, pltpu.roll(row, shift=(-dj) % W, axis=0))
            cm_ref[r] = jnp.where(col_ok, m, jnp.zeros_like(m))

        if col_taps is not None:
            mw0 = mw_ref[0]                                  # (Wo, W), hoisted once
        else:
            mws = [mw_ref[ki] for ki in range(fh)]

        # ---- pass 2: output rows in chunks; vertical taps = scalar row adds over
        # the scratch, horizontal taps + padding + W-decimation = one batched matmul.
        # TODO(synk): for Ho in the hundreds, wrap this in lax.fori_loop(unroll>1).
        for c0 in range(0, Ho, oh_chunk):
            ohs = list(range(c0, min(c0 + oh_chunk, Ho)))
            mp_cache = {}

            def mpool_row(r, _cache=mp_cache):
                # stride-1 max-pool output row r, from the column-max scratch.
                if r not in _cache:
                    m = cm_ref[r]
                    for di in range(1, kh):
                        m = jnp.maximum(m, cm_ref[r + di])
                    _cache[r] = m.astype(jnp.float32)
                return _cache[r]

            if col_taps is not None:                         # separable (default) path
                cols = []
                for oh in ohs:
                    acc = None
                    for ki in range(fh):
                        r = sh * oh - ph + ki
                        if 0 <= r < Hm:                      # zero 'same' pad rows: skip
                            t = col_taps[ki] * mpool_row(r)  # compile-time scalar weight
                            acc = t if acc is None else acc + t
                    cols.append(zero_row if acc is None else acc)
                cat = cols[0] if len(cols) == 1 else jnp.concatenate(cols, axis=1)
                # One (Wo, W) x (W, chunk*bt) matmul per chunk; HIGHEST kept on
                # purpose (see header) -- single-pass bf16 misses the tolerance.
                res = jnp.dot(mw0, cat, preferred_element_type=jnp.float32,
                              precision=jax.lax.Precision.HIGHEST)
            else:                                            # generic fallback
                res = None
                for ki in range(fh):
                    cols = []
                    for oh in ohs:
                        r = sh * oh - ph + ki
                        cols.append(mpool_row(r) if 0 <= r < Hm else zero_row)
                    cat = cols[0] if len(cols) == 1 else jnp.concatenate(cols, axis=1)
                    t = jnp.dot(mws[ki], cat, preferred_element_type=jnp.float32,
                                precision=jax.lax.Precision.HIGHEST)
                    res = t if res is None else res + t

            for idx, oh in enumerate(ohs):                   # lane-aligned splits
                out_ref[oh] = res[:, idx * bt:(idx + 1) * bt].astype(out_ref.dtype)

    return kernel


def blurmax_pool2d_pallas(x, filt2d, kernel_size=2, stride=None):
    """x: (N, C, H, W); filt2d: (3, 3) or (1, 1, 3, 3) blur filter (concrete)."""
    if stride is None:
        stride = kernel_size
    kh, kw = _pair(kernel_size)
    sh, sw = _pair(stride)
    # TODO(synk): max-pool padding>0 / dilation>1 / ceil_mode=True and the
    # blur_2d tiny-input early-return are not implemented (module defaults used).

    N, C, H, W = x.shape
    B = N * C
    Hm = H - kh + 1
    Wm = W - kw + 1
    assert Hm >= 1 and Wm >= 1, "input smaller than the max-pool window"

    filt_np = np.asarray(jax.device_get(filt2d), dtype=np.float32)
    if filt_np.ndim == 4:
        filt_np = filt_np[0, 0]
    fh, fw = filt_np.shape
    assert fh % 2 == 1 and fw % 2 == 1, "blur filter must have odd spatial size"
    ph, pw = fh // 2, fw // 2

    Ho = (Hm + 2 * ph - fh) // sh + 1
    Wo = (Wm + 2 * pw - fw) // sw + 1

    mw_np, col_taps = _build_blur_matrices(filt_np, W, Wm, Wo, sw)
    mw = jnp.asarray(mw_np)

    itemsize = jnp.dtype(x.dtype).itemsize

    # ---- per-generation VMEM budgeting ----
    try:
        vmem_cap = int(pltpu.get_tpu_info().vmem_capacity_bytes)
    except Exception:
        vmem_cap = 64 * 1024 * 1024                          # v7x-safe fallback

    # Lane padding: B up to a multiple of 128, and at least 256 so the grid has
    # >= 2 steps (v7x megacore, DMA overlap).  Padded lanes are zeros.
    B_pad = max(256, ((B + 127) // 128) * 128)

    oh_chunk = max(1, min(8, Ho))

    def per_lane_bytes(chunk):
        return (2 * H * W * itemsize             # double-buffered input block
                + 2 * Ho * Wo * itemsize         # double-buffered output block
                + H * W * itemsize               # colmax VMEM scratch (single)
                + (3 * chunk * W + chunk * Wo + 4 * W) * 4)  # f32 working set

    # bt: smallest lane tile whose per-step HBM traffic comfortably exceeds the
    # ~0.35us grid overhead (capped at 1024), fitting the VMEM budget with
    # >= 2 grid steps (prefer >= 4).
    hbm_bytes_per_lane = (H * W + Ho * Wo) * itemsize
    target_block_bytes = 1 << 20
    bt_work = -(-target_block_bytes // hbm_bytes_per_lane)
    bt_work = int(min(1024, max(128, ((bt_work + 127) // 128) * 128)))

    budget = int(vmem_cap * 0.55)
    cands = [c for c in range(128, min(B_pad, 1024) + 1, 128) if B_pad % c == 0]
    feasible = [c for c in cands
                if c * per_lane_bytes(oh_chunk) <= budget and B_pad // c >= 2]
    if not feasible:
        # TODO(synk): tile H with a (kh + fh - 2)-row halo when even bt=128
        # overflows the v7x 64 MiB budget (very large spatial inputs).
        feasible = [128]
    pref = [c for c in feasible if c <= bt_work] or [min(feasible)]
    ge4 = [c for c in pref if B_pad // c >= 4]
    bt = max(ge4) if ge4 else max(pref)
    # Even grid for v7x's two TensorCores, at no extra padded work.
    if (B_pad // bt) % 2 == 1 and bt % 256 == 0:
        bt //= 2
    oh_chunk = max(1, min(oh_chunk, max(1, 4096 // bt)))

    need = bt * per_lane_bytes(oh_chunk) + 2 * mw_np.size * 4 + (4 << 20)
    vmem_limit = int(min(max(need, 32 * 1024 * 1024), int(vmem_cap * 0.75)))

    kernel = _make_kernel(H, W, kh, kw, fh, sh, Hm, Wm, Ho, Wo, bt, col_taps, oh_chunk)

    # TODO(synk): the NCHW <-> (H, W, B) relayout + lane padding are plain-XLA
    # glue (one extra HBM pass each); a fully fused path would consume NCHW
    # blocks directly and relayout in VMEM at the cost of compile risk.
    xk = jnp.transpose(x.reshape(B, H, W), (1, 2, 0))        # (H, W, B), B lane-dense
    if B_pad != B:
        xk = jnp.pad(xk, ((0, 0), (0, 0), (0, B_pad - B)))

    out_k = pl.pallas_call(
        kernel,
        out_shape=jax.ShapeDtypeStruct((Ho, Wo, B_pad), x.dtype),
        grid=(B_pad // bt,),
        in_specs=[
            pl.BlockSpec((H, W, bt), lambda b: (0, 0, b)),
            pl.BlockSpec(mw_np.shape, lambda b: (0, 0, 0)),
        ],
        out_specs=pl.BlockSpec((Ho, Wo, bt), lambda b: (0, 0, b)),
        scratch_shapes=[pltpu.VMEM((H, W, bt), x.dtype)],    # column-max cache
        compiler_params=pltpu.CompilerParams(
            dimension_semantics=("parallel",),
            vmem_limit_bytes=vmem_limit,
        ),
        # TODO(synk): if profiling still shows exposed input DMA, add
        # pipeline_mode=pl.Buffered(3) on in_specs[0] (budget-check on v7x).
    )(xk, mw)

    out = out_k[:, :, :B]                                    # drop lane padding
    return jnp.transpose(out, (2, 0, 1)).reshape(N, C, Ho, Wo)


def blurmax_pool2d_ref(x, filt2d, kernel_size=2, stride=2):
    """Pure-JAX reference matching torch semantics."""
    N, C, H, W = x.shape
    kh, kw = _pair(kernel_size)
    sh, sw = _pair(stride)
    maxs = jax.lax.reduce_window(
        x, -jnp.inf, jax.lax.max,
        window_dimensions=(1, 1, kh, kw),
        window_strides=(1, 1, 1, 1),
        padding="VALID",
    )
    f2 = jnp.asarray(filt2d).reshape(3, 3)
    f = jnp.broadcast_to(f2[None, None, :, :], (C, 1, 3, 3))
    return jax.lax.conv_general_dilated(
        maxs, f,
        window_strides=(sh, sw),
        padding=((1, 1), (1, 1)),
        dimension_numbers=("NCHW", "OIHW", "NCHW"),
        feature_group_count=C,
        precision=jax.lax.Precision.HIGHEST,
    )


if __name__ == "__main__":
    key = jax.random.PRNGKey(0)
    N, C, H, W = 2, 4, 16, 16
    x = jax.random.normal(key, (N, C, H, W), dtype=jnp.float32)

    # The module's registered default blur filter.
    filt2d = jnp.array([[1.0, 2.0, 1.0],
                        [2.0, 4.0, 2.0],
                        [1.0, 2.0, 1.0]], dtype=jnp.float32) / 16.0

    # BlurMaxPool2d(kernel_size=2): stride defaults to kernel_size -> 2.
    out = blurmax_pool2d_pallas(x, filt2d, kernel_size=2)
    out = jax.block_until_ready(out)

    ref = blurmax_pool2d_ref(x, filt2d, kernel_size=2, stride=2)
    ref = jax.block_until_ready(ref)

    assert out.shape == (N, C, 8, 8), out.shape
    if not np.allclose(np.asarray(out), np.asarray(ref), rtol=1e-4, atol=1e-5):
        raise AssertionError("Pallas kernel mismatch vs reference")

    print("KERNEL_OK")
</pallas_src>

<mosaic_0001>
module attributes {stable_mosaic.version = 11 : i64} {
  func.func @kernel(%arg0: i32, %arg1: memref<16x16x128xf32, #tpu.memory_space<vmem>>, %arg2: memref<1x8x16xf32, #tpu.memory_space<vmem>>, %arg3: memref<8x8x128xf32, #tpu.memory_space<vmem>>, %arg4: memref<16x16x128xf32, #tpu.memory_space<vmem>>) attributes {dimension_semantics = [#tpu.dimension_semantics<parallel>], iteration_bounds = array<i64: 2>, scalar_prefetch = 0 : i64, scratch_operands = 1 : i64, tpu.core_type = #tpu.core_type<tc>, window_params = [{transform_indices = @transform_0, window_bounds = array<i64: 16, 16, 128>}, {pipeline_mode = #tpu.pipeline_mode<synchronous>, transform_indices = @transform_1, window_bounds = array<i64: 1, 8, 16>}, {transform_indices = @transform_2, window_bounds = array<i64: 8, 8, 128>}]} {
    %0 = tpu.iota {dimensions = array<i32: 0>} : vector<16x128xi32>
    %c15_i32 = arith.constant 15 : i32
    %1 = vector.broadcast %c15_i32 : i32 to vector<16x128xi32>
    %2 = arith.cmpi slt, %0, %1 : vector<16x128xi32>
    %c0 = arith.constant 0 : index
    %c0_0 = arith.constant 0 : index
    %c0_1 = arith.constant 0 : index
    %3 = vector.load %arg1[%c0, %c0_0, %c0_1] : memref<16x16x128xf32, #tpu.memory_space<vmem>>, vector<1x16x128xf32>
    %4 = vector.shape_cast %3 : vector<1x16x128xf32> to vector<16x128xf32>
    %c15_i32_2 = arith.constant 15 : i32
    %5 = tpu.dynamic_rotate %4 by %c15_i32_2 dim 0 : vector<16x128xf32>, i32 -> vector<16x128xf32>
    %6 = arith.maximumf %4, %5 : vector<16x128xf32>
    %cst = arith.constant 0.000000e+00 : f32
    %7 = vector.broadcast %cst : f32 to vector<16x128xf32>
    %8 = arith.select %2, %6, %7 : vector<16x128xi1>, vector<16x128xf32>
    %c0_3 = arith.constant 0 : index
    %c0_4 = arith.constant 0 : index
    %c0_5 = arith.constant 0 : index
    %9 = vector.load %arg4[%c0_3, %c0_4, %c0_5] : memref<16x16x128xf32, #tpu.memory_space<vmem>>, vector<1x16x128xf32>
    %10 = vector.shape_cast %9 : vector<1x16x128xf32> to vector<16x128xf32>
    %11 = vector.shape_cast %8 : vector<16x128xf32> to vector<1x16x128xf32>
    tpu.vector_store %arg4[%c0_3, %c0_4, %c0_5], %11 {strides = array<i32>} : memref<16x16x128xf32, #tpu.memory_space<vmem>>, vector<1x16x128xf32>,
    %c1 = arith.constant 1 : index
    %c0_6 = arith.constant 0 : index
    %c0_7 = arith.constant 0 : index
    %12 = vector.load %arg1[%c1, %c0_6, %c0_7] : memref<16x16x128xf32, #tpu.memory_space<vmem>>, vector<1x16x128xf32>
    %13 = vector.shape_cast %12 : vector<1x16x128xf32> to vector<16x128xf32>
    %c15_i32_8 = arith.constant 15 : i32
    %14 = tpu.dynamic_rotate %13 by %c15_i32_8 dim 0 : vector<16x128xf32>, i32 -> vector<16x128xf32>
    %15 = arith.maximumf %13, %14 : vector<16x128xf32>
    %cst_9 = arith.constant 0.000000e+00 : f32
    %16 = vector.broadcast %cst_9 : f32 to vector<16x128xf32>
    %17 = arith.select %2, %15, %16 : vector<16x128xi1>, vector<16x128xf32>
    %c1_10 = arith.constant 1 : index
    %c0_11 = arith.constant 0 : index
    %c0_12 = arith.constant 0 : index
    %18 = vector.load %arg4[%c1_10, %c0_11, %c0_12] : memref<16x16x128xf32, #tpu.memory_space<vmem>>, vector<1x16x128xf32>
    %19 = vector.shape_cast %18 : vector<1x16x128xf32> to vector<16x128xf32>
    %20 = vector.shape_cast %17 : vector<16x128xf32> to vector<1x16x128xf32>
    tpu.vector_store %arg4[%c1_10, %c0_11, %c0_12], %20 {strides = array<i32>} : memref<16x16x128xf32, #tpu.memory_space<vmem>>, vector<1x16x128xf32>,
    %c2 = arith.constant 2 : index
    %c0_13 = arith.constant 0 : index
    %c0_14 = arith.constant 0 : index
    %21 = vector.load %arg1[%c2, %c0_13, %c0_14] : memref<16x16x128xf32, #tpu.memory_space<vmem>>, vector<1x16x128xf32>
    %22 = vector.shape_cast %21 : vector<1x16x128xf32> to vector<16x128xf32>
    %c15_i32_15 = arith.constant 15 : i32
    %23 = tpu.dynamic_rotate %22 by %c15_i32_15 dim 0 : vector<16x128xf32>, i32 -> vector<16x128xf32>
    %24 = arith.maximumf %22, %23 : vector<16x128xf32>
    %cst_16 = arith.constant 0.000000e+00 : f32
    %25 = vector.broadcast %cst_16 : f32 to vector<16x128xf32>
    %26 = arith.select %2, %24, %25 : vector<16x128xi1>, vector<16x128xf32>
    %c2_17 = arith.constant 2 : index
    %c0_18 = arith.constant 0 : index
    %c0_19 = arith.constant 0 : index
    %27 = vector.load %arg4[%c2_17, %c0_18, %c0_19] : memref<16x16x128xf32, #tpu.memory_space<vmem>>, vector<1x16x128xf32>
    %28 = vector.shape_cast %27 : vector<1x16x128xf32> to vector<16x128xf32>
    %29 = vector.shape_cast %26 : vector<16x128xf32> to vector<1x16x128xf32>
    tpu.vector_store %arg4[%c2_17, %c0_18, %c0_19], %29 {strides = array<i32>} : memref<16x16x128xf32, #tpu.memory_space<vmem>>, vector<1x16x128xf32>,
    %c3 = arith.constant 3 : index
    %c0_20 = arith.constant 0 : index
    %c0_21 = arith.constant 0 : index
    %30 = vector.load %arg1[%c3, %c0_20, %c0_21] : memref<16x16x128xf32, #tpu.memory_space<vmem>>, vector<1x16x128xf32>
    %31 = vector.shape_cast %30 : vector<1x16x128xf32> to vector<16x128xf32>
    %c15_i32_22 = arith.constant 15 : i32
    %32 = tpu.dynamic_rotate %31 by %c15_i32_22 dim 0 : vector<16x128xf32>, i32 -> vector<16x128xf32>
    %33 = arith.maximumf %31, %32 : vector<16x128xf32>
    %cst_23 = arith.constant 0.000000e+00 : f32
    %34 = vector.broadcast %cst_23 : f32 to vector<16x128xf32>
    %35 = arith.select %2, %33, %34 : vector<16x128xi1>, vector<16x128xf32>
    %c3_24 = arith.constant 3 : index
    %c0_25 = arith.constant 0 : index
    %c0_26 = arith.constant 0 : index
    %36 = vector.load %arg4[%c3_24, %c0_25, %c0_26] : memref<16x16x128xf32, #tpu.memory_space<vmem>>, vector<1x16x128xf32>
    %37 = vector.shape_cast %36 : vector<1x16x128xf32> to vector<16x128xf32>
    %38 = vector.shape_cast %35 : vector<16x128xf32> to vector<1x16x128xf32>
    tpu.vector_store %arg4[%c3_24, %c0_25, %c0_26], %38 {strides = array<i32>} : memref<16x16x128xf32, #tpu.memory_space<vmem>>, vector<1x16x128xf32>,
    %c4 = arith.constant 4 : index
    %c0_27 = arith.constant 0 : index
    %c0_28 = arith.constant 0 : index
    %39 = vector.load %arg1[%c4, %c0_27, %c0_28] : memref<16x16x128xf32, #tpu.memory_space<vmem>>, vector<1x16x128xf32>
    %40 = vector.shape_cast %39 : vector<1x16x128xf32> to vector<16x128xf32>
    %c15_i32_29 = arith.constant 15 : i32
    %41 = tpu.dynamic_rotate %40 by %c15_i32_29 dim 0 : vector<16x128xf32>, i32 -> vector<16x128xf32>
    %42 = arith.maximumf %40, %41 : vector<16x128xf32>
    %cst_30 = arith.constant 0.000000e+00 : f32
    %43 = vector.broadcast %cst_30 : f32 to vector<16x128xf32>
    %44 = arith.select %2, %42, %43 : vector<16x128xi1>, vector<16x128xf32>
    %c4_31 = arith.constant 4 : index
    %c0_32 = arith.constant 0 : index
    %c0_33 = arith.constant 0 : index
    %45 = vector.load %arg4[%c4_31, %c0_32, %c0_33] : memref<16x16x128xf32, #tpu.memory_space<vmem>>, vector<1x16x128xf32>
    %46 = vector.shape_cast %45 : vector<1x16x128xf32> to vector<16x128xf32>
    %47 = vector.shape_cast %44 : vector<16x128xf32> to vector<1x16x128xf32>
    tpu.vector_store %arg4[%c4_31, %c0_32, %c0_33], %47 {strides = array<i32>} : memref<16x16x128xf32, #tpu.memory_space<vmem>>, vector<1x16x128xf32>,
    %c5 = arith.constant 5 : index
    %c0_34 = arith.constant 0 : index
    %c0_35 = arith.constant 0 : index
    %48 = vector.load %arg1[%c5, %c0_34, %c0_35] : memref<16x16x128xf32, #tpu.memory_space<vmem>>, vector<1x16x128xf32>
    %49 = vector.shape_cast %48 : vector<1x16x128xf32> to vector<16x128xf32>
    %c15_i32_36 = arith.constant 15 : i32
    %50 = tpu.dynamic_rotate %49 by %c15_i32_36 dim 0 : vector<16x128xf32>, i32 -> vector<16x128xf32>
    %51 = arith.maximumf %49, %50 : vector<16x128xf32>
    %cst_37 = arith.constant 0.000000e+00 : f32
    %52 = vector.broadcast %cst_37 : f32 to vector<16x128xf32>
    %53 = arith.select %2, %51, %52 : vector<16x128xi1>, vector<16x128xf32>
    %c5_38 = arith.constant 5 : index
    %c0_39 = arith.constant 0 : index
    %c0_40 = arith.constant 0 : index
    %54 = vector.load %arg4[%c5_38, %c0_39, %c0_40] : memref<16x16x128xf32, #tpu.memory_space<vmem>>, vector<1x16x128xf32>
    %55 = vector.shape_cast %54 : vector<1x16x128xf32> to vector<16x128xf32>
    %56 = vector.shape_cast %53 : vector<16x128xf32> to vector<1x16x128xf32>
    tpu.vector_store %arg4[%c5_38, %c0_39, %c0_40], %56 {strides = array<i32>} : memref<16x16x128xf32, #tpu.memory_space<vmem>>, vector<1x16x128xf32>,
    %c6 = arith.constant 6 : index
    %c0_41 = arith.constant 0 : index
    %c0_42 = arith.constant 0 : index
    %57 = vector.load %arg1[%c6, %c0_41, %c0_42] : memref<16x16x128xf32, #tpu.memory_space<vmem>>, vector<1x16x128xf32>
    %58 = vector.shape_cast %57 : vector<1x16x128xf32> to vector<16x128xf32>
    %c15_i32_43 = arith.constant 15 : i32
    %59 = tpu.dynamic_rotate %58 by %c15_i32_43 dim 0 : vector<16x128xf32>, i32 -> vector<16x128xf32>
    %60 = arith.maximumf %58, %59 : vector<16x128xf32>
    %cst_44 = arith.constant 0.000000e+00 : f32
    %61 = vector.broadcast %cst_44 : f32 to vector<16x128xf32>
    %62 = arith.select %2, %60, %61 : vector<16x128xi1>, vector<16x128xf32>
    %c6_45 = arith.constant 6 : index
    %c0_46 = arith.constant 0 : index
    %c0_47 = arith.constant 0 : index
    %63 = vector.load %arg4[%c6_45, %c0_46, %c0_47] : memref<16x16x128xf32, #tpu.memory_space<vmem>>, vector<1x16x128xf32>
    %64 = vector.shape_cast %63 : vector<1x16x128xf32> to vector<16x128xf32>
    %65 = vector.shape_cast %62 : vector<16x128xf32> to vector<1x16x128xf32>
    tpu.vector_store %arg4[%c6_45, %c0_46, %c0_47], %65 {strides = array<i32>} : memref<16x16x128xf32, #tpu.memory_space<vmem>>, vector<1x16x128xf32>,
    %c7 = arith.constant 7 : index
    %c0_48 = arith.constant 0 : index
    %c0_49 = arith.constant 0 : index
    %66 = vector.load %arg1[%c7, %c0_48, %c0_49] : memref<16x16x128xf32, #tpu.memory_space<vmem>>, vector<1x16x128xf32>
    %67 = vector.shape_cast %66 : vector<1x16x128xf32> to vector<16x128xf32>
    %c15_i32_50 = arith.constant 15 : i32
    %68 = tpu.dynamic_rotate %67 by %c15_i32_50 dim 0 : vector<16x128xf32>, i32 -> vector<16x128xf32>
    %69 = arith.maximumf %67, %68 : vector<16x128xf32>
    %cst_51 = arith.constant 0.000000e+00 : f32
    %70 = vector.broadcast %cst_51 : f32 to vector<16x128xf32>
    %71 = arith.select %2, %69, %70 : vector<16x128xi1>, vector<16x128xf32>
    %c7_52 = arith.constant 7 : index
    %c0_53 = arith.constant 0 : index
    %c0_54 = arith.constant 0 : index
    %72 = vector.load %arg4[%c7_52, %c0_53, %c0_54] : memref<16x16x128xf32, #tpu.memory_space<vmem>>, vector<1x16x128xf32>
    %73 = vector.shape_cast %72 : vector<1x16x128xf32> to vector<16x128xf32>
    %74 = vector.shape_cast %71 : vector<16x128xf32> to vector<1x16x128xf32>
    tpu.vector_store %arg4[%c7_52, %c0_53, %c0_54], %74 {strides = array<i32>} : memref<16x16x128xf32, #tpu.memory_space<vmem>>, vector<1x16x128xf32>,
    %c8 = arith.constant 8 : index
    %c0_55 = arith.constant 0 : index
    %c0_56 = arith.constant 0 : index
    %75 = vector.load %arg1[%c8, %c0_55, %c0_56] : memref<16x16x128xf32, #tpu.memory_space<vmem>>, vector<1x16x128xf32>
    %76 = vector.shape_cast %75 : vector<1x16x128xf32> to vector<16x128xf32>
    %c15_i32_57 = arith.constant 15 : i32
    %77 = tpu.dynamic_rotate %76 by %c15_i32_57 dim 0 : vector<16x128xf32>, i32 -> vector<16x128xf32>
    %78 = arith.maximumf %76, %77 : vector<16x128xf32>
    %cst_58 = arith.constant 0.000000e+00 : f32
    %79 = vector.broadcast %cst_58 : f32 to vector<16x128xf32>
    %80 = arith.select %2, %78, %79 : vector<16x128xi1>, vector<16x128xf32>
    %c8_59 = arith.constant 8 : index
    %c0_60 = arith.constant 0 : index
    %c0_61 = arith.constant 0 : index
    %81 = vector.load %arg4[%c8_59, %c0_60, %c0_61] : memref<16x16x128xf32, #tpu.memory_space<vmem>>, vector<1x16x128xf32>
    %82 = vector.shape_cast %81 : vector<1x16x128xf32> to vector<16x128xf32>
    %83 = vector.shape_cast %80 : vector<16x128xf32> to vector<1x16x128xf32>
    tpu.vector_store %arg4[%c8_59, %c0_60, %c0_61], %83 {strides = array<i32>} : memref<16x16x128xf32, #tpu.memory_space<vmem>>, vector<1x16x128xf32>,
    %c9 = arith.constant 9 : index
    %c0_62 = arith.constant 0 : index
    %c0_63 = arith.constant 0 : index
    %84 = vector.load %arg1[%c9, %c0_62, %c0_63] : memref<16x16x128xf32, #tpu.memory_space<vmem>>, vector<1x16x128xf32>
    %85 = vector.shape_cast %84 : vector<1x16x128xf32> to vector<16x128xf32>
    %c15_i32_64 = arith.constant 15 : i32
    %86 = tpu.dynamic_rotate %85 by %c15_i32_64 dim 0 : vector<16x128xf32>, i32 -> vector<16x128xf32>
    %87 = arith.maximumf %85, %86 : vector<16x128xf32>
    %cst_65 = arith.constant 0.000000e+00 : f32
    %88 = vector.broadcast %cst_65 : f32 to vector<16x128xf32>
    %89 = arith.select %2, %87, %88 : vector<16x128xi1>, vector<16x128xf32>
    %c9_66 = arith.constant 9 : index
    %c0_67 = arith.constant 0 : index
    %c0_68 = arith.constant 0 : index
    %90 = vector.load %arg4[%c9_66, %c0_67, %c0_68] : memref<16x16x128xf32, #tpu.memory_space<vmem>>, vector<1x16x128xf32>
    %91 = vector.shape_cast %90 : vector<1x16x128xf32> to vector<16x128xf32>
    %92 = vector.shape_cast %89 : vector<16x128xf32> to vector<1x16x128xf32>
    tpu.vector_store %arg4[%c9_66, %c0_67, %c0_68], %92 {strides = array<i32>} : memref<16x16x128xf32, #tpu.memory_space<vmem>>, vector<1x16x128xf32>,
    %c10 = arith.constant 10 : index
    %c0_69 = arith.constant 0 : index
    %c0_70 = arith.constant 0 : index
    %93 = vector.load %arg1[%c10, %c0_69, %c0_70] : memref<16x16x128xf32, #tpu.memory_space<vmem>>, vector<1x16x128xf32>
    %94 = vector.shape_cast %93 : vector<1x16x128xf32> to vector<16x128xf32>
    %c15_i32_71 = arith.constant 15 : i32
    %95 = tpu.dynamic_rotate %94 by %c15_i32_71 dim 0 : vector<16x128xf32>, i32 -> vector<16x128xf32>
    %96 = arith.maximumf %94, %95 : vector<16x128xf32>
    %cst_72 = arith.constant 0.000000e+00 : f32
    %97 = vector.broadcast %cst_72 : f32 to vector<16x128xf32>
    %98 = arith.select %2, %96, %97 : vector<16x128xi1>, vector<16x128xf32>
    %c10_73 = arith.constant 10 : index
    %c0_74 = arith.constant 0 : index
    %c0_75 = arith.constant 0 : index
    %99 = vector.load %arg4[%c10_73, %c0_74, %c0_75] : memref<16x16x128xf32, #tpu.memory_space<vmem>>, vector<1x16x128xf32>
    %100 = vector.shape_cast %99 : vector<1x16x128xf32> to vector<16x128xf32>
    %101 = vector.shape_cast %98 : vector<16x128xf32> to vector<1x16x128xf32>
    tpu.vector_store %arg4[%c10_73, %c0_74, %c0_75], %101 {strides = array<i32>} : memref<16x16x128xf32, #tpu.memory_space<vmem>>, vector<1x16x128xf32>,
    %c11 = arith.constant 11 : index
    %c0_76 = arith.constant 0 : index
    %c0_77 = arith.constant 0 : index
    %102 = vector.load %arg1[%c11, %c0_76, %c0_77] : memref<16x16x128xf32, #tpu.memory_space<vmem>>, vector<1x16x128xf32>
    %103 = vector.shape_cast %102 : vector<1x16x128xf32> to vector<16x128xf32>
    %c15_i32_78 = arith.constant 15 : i32
    %104 = tpu.dynamic_rotate %103 by %c15_i32_78 dim 0 : vector<16x128xf32>, i32 -> vector<16x128xf32>
    %105 = arith.maximumf %103, %104 : vector<16x128xf32>
    %cst_79 = arith.constant 0.000000e+00 : f32
    %106 = vector.broadcast %cst_79 : f32 to vector<16x128xf32>
    %107 = arith.select %2, %105, %106 : vector<16x128xi1>, vector<16x128xf32>
    %c11_80 = arith.constant 11 : index
    %c0_81 = arith.constant 0 : index
    %c0_82 = arith.constant 0 : index
    %108 = vector.load %arg4[%c11_80, %c0_81, %c0_82] : memref<16x16x128xf32, #tpu.memory_space<vmem>>, vector<1x16x128xf32>
    %109 = vector.shape_cast %108 : vector<1x16x128xf32> to vector<16x128xf32>
    %110 = vector.shape_cast %107 : vector<16x128xf32> to vector<1x16x128xf32>
    tpu.vector_store %arg4[%c11_80, %c0_81, %c0_82], %110 {strides = array<i32>} : memref<16x16x128xf32, #tpu.memory_space<vmem>>, vector<1x16x128xf32>,
    %c12 = arith.constant 12 : index
    %c0_83 = arith.constant 0 : index
    %c0_84 = arith.constant 0 : index
    %111 = vector.load %arg1[%c12, %c0_83, %c0_84] : memref<16x16x128xf32, #tpu.memory_space<vmem>>, vector<1x16x128xf32>
    %112 = vector.shape_cast %111 : vector<1x16x128xf32> to vector<16x128xf32>
    %c15_i32_85 = arith.constant 15 : i32
    %113 = tpu.dynamic_rotate %112 by %c15_i32_85 dim 0 : vector<16x128xf32>, i32 -> vector<16x128xf32>
    %114 = arith.maximumf %112, %113 : vector<16x128xf32>
    %cst_86 = arith.constant 0.000000e+00 : f32
    %115 = vector.broadcast %cst_86 : f32 to vector<16x128xf32>
    %116 = arith.select %2, %114, %115 : vector<16x128xi1>, vector<16x128xf32>
    %c12_87 = arith.constant 12 : index
    %c0_88 = arith.constant 0 : index
    %c0_89 = arith.constant 0 : index
    %117 = vector.load %arg4[%c12_87, %c0_88, %c0_89] : memref<16x16x128xf32, #tpu.memory_space<vmem>>, vector<1x16x128xf32>
    %118 = vector.shape_cast %117 : vector<1x16x128xf32> to vector<16x128xf32>
    %119 = vector.shape_cast %116 : vector<16x128xf32> to vector<1x16x128xf32>
    tpu.vector_store %arg4[%c12_87, %c0_88, %c0_89], %119 {strides = array<i32>} : memref<16x16x128xf32, #tpu.memory_space<vmem>>, vector<1x16x128xf32>,
    %c13 = arith.constant 13 : index
    %c0_90 = arith.constant 0 : index
    %c0_91 = arith.constant 0 : index
    %120 = vector.load %arg1[%c13, %c0_90, %c0_91] : memref<16x16x128xf32, #tpu.memory_space<vmem>>, vector<1x16x128xf32>
    %121 = vector.shape_cast %120 : vector<1x16x128xf32> to vector<16x128xf32>
    %c15_i32_92 = arith.constant 15 : i32
    %122 = tpu.dynamic_rotate %121 by %c15_i32_92 dim 0 : vector<16x128xf32>, i32 -> vector<16x128xf32>
    %123 = arith.maximumf %121, %122 : vector<16x128xf32>
    %cst_93 = arith.constant 0.000000e+00 : f32
    %124 = vector.broadcast %cst_93 : f32 to vector<16x128xf32>
    %125 = arith.select %2, %123, %124 : vector<16x128xi1>, vector<16x128xf32>
    %c13_94 = arith.constant 13 : index
    %c0_95 = arith.constant 0 : index
    %c0_96 = arith.constant 0 : index
    %126 = vector.load %arg4[%c13_94, %c0_95, %c0_96] : memref<16x16x128xf32, #tpu.memory_space<vmem>>, vector<1x16x128xf32>
    %127 = vector.shape_cast %126 : vector<1x16x128xf32> to vector<16x128xf32>
    %128 = vector.shape_cast %125 : vector<16x128xf32> to vector<1x16x128xf32>
    tpu.vector_store %arg4[%c13_94, %c0_95, %c0_96], %128 {strides = array<i32>} : memref<16x16x128xf32, #tpu.memory_space<vmem>>, vector<1x16x128xf32>,
    %c14 = arith.constant 14 : index
    %c0_97 = arith.constant 0 : index
    %c0_98 = arith.constant 0 : index
    %129 = vector.load %arg1[%c14, %c0_97, %c0_98] : memref<16x16x128xf32, #tpu.memory_space<vmem>>, vector<1x16x128xf32>
    %130 = vector.shape_cast %129 : vector<1x16x128xf32> to vector<16x128xf32>
    %c15_i32_99 = arith.constant 15 : i32
    %131 = tpu.dynamic_rotate %130 by %c15_i32_99 dim 0 : vector<16x128xf32>, i32 -> vector<16x128xf32>
    %132 = arith.maximumf %130, %131 : vector<16x128xf32>
    %cst_100 = arith.constant 0.000000e+00 : f32
    %133 = vector.broadcast %cst_100 : f32 to vector<16x128xf32>
    %134 = arith.select %2, %132, %133 : vector<16x128xi1>, vector<16x128xf32>
    %c14_101 = arith.constant 14 : index
    %c0_102 = arith.constant 0 : index
    %c0_103 = arith.constant 0 : index
    %135 = vector.load %arg4[%c14_101, %c0_102, %c0_103] : memref<16x16x128xf32, #tpu.memory_space<vmem>>, vector<1x16x128xf32>
    %136 = vector.shape_cast %135 : vector<1x16x128xf32> to vector<16x128xf32>
    %137 = vector.shape_cast %134 : vector<16x128xf32> to vector<1x16x128xf32>
    tpu.vector_store %arg4[%c14_101, %c0_102, %c0_103], %137 {strides = array<i32>} : memref<16x16x128xf32, #tpu.memory_space<vmem>>, vector<1x16x128xf32>,
    %c15 = arith.constant 15 : index
    %c0_104 = arith.constant 0 : index
    %c0_105 = arith.constant 0 : index
    %138 = vector.load %arg1[%c15, %c0_104, %c0_105] : memref<16x16x128xf32, #tpu.memory_space<vmem>>, vector<1x16x128xf32>
    %139 = vector.shape_cast %138 : vector<1x16x128xf32> to vector<16x128xf32>
    %c15_i32_106 = arith.constant 15 : i32
    %140 = tpu.dynamic_rotate %139 by %c15_i32_106 dim 0 : vector<16x128xf32>, i32 -> vector<16x128xf32>
    %141 = arith.maximumf %139, %140 : vector<16x128xf32>
    %cst_107 = arith.constant 0.000000e+00 : f32
    %142 = vector.broadcast %cst_107 : f32 to vector<16x128xf32>
    %143 = arith.select %2, %141, %142 : vector<16x128xi1>, vector<16x128xf32>
    %c15_108 = arith.constant 15 : index
    %c0_109 = arith.constant 0 : index
    %c0_110 = arith.constant 0 : index
    %144 = vector.load %arg4[%c15_108, %c0_109, %c0_110] : memref<16x16x128xf32, #tpu.memory_space<vmem>>, vector<1x16x128xf32>
    %145 = vector.shape_cast %144 : vector<1x16x128xf32> to vector<16x128xf32>
    %146 = vector.shape_cast %143 : vector<16x128xf32> to vector<1x16x128xf32>
    tpu.vector_store %arg4[%c15_108, %c0_109, %c0_110], %146 {strides = array<i32>} : memref<16x16x128xf32, #tpu.memory_space<vmem>>, vector<1x16x128xf32>,
    %c0_111 = arith.constant 0 : index
    %c0_112 = arith.constant 0 : index
    %c0_113 = arith.constant 0 : index
    %147 = vector.load %arg2[%c0_111, %c0_112, %c0_113] : memref<1x8x16xf32, #tpu.memory_space<vmem>>, vector<1x8x16xf32>
    %148 = vector.shape_cast %147 : vector<1x8x16xf32> to vector<8x16xf32>
    %c0_114 = arith.constant 0 : index
    %c0_115 = arith.constant 0 : index
    %c0_116 = arith.constant 0 : index
    %149 = vector.load %arg4[%c0_114, %c0_115, %c0_116] : memref<16x16x128xf32, #tpu.memory_space<vmem>>, vector<1x16x128xf32>
    %150 = vector.shape_cast %149 : vector<1x16x128xf32> to vector<16x128xf32>
    %c1_117 = arith.constant 1 : index
    %c0_118 = arith.constant 0 : index
    %c0_119 = arith.constant 0 : index
    %151 = vector.load %arg4[%c1_117, %c0_118, %c0_119] : memref<16x16x128xf32, #tpu.memory_space<vmem>>, vector<1x16x128xf32>
    %152 = vector.shape_cast %151 : vector<1x16x128xf32> to vector<16x128xf32>
    %153 = arith.maximumf %150, %152 : vector<16x128xf32>
    %cst_120 = arith.constant -0.306186229 : f32
    %154 = vector.broadcast %cst_120 : f32 to vector<16x128xf32>
    %155 = arith.mulf %154, %153 : vector<16x128xf32>
    %c1_121 = arith.constant 1 : index
    %c0_122 = arith.constant 0 : index
    %c0_123 = arith.constant 0 : index
    %156 = vector.load %arg4[%c1_121, %c0_122, %c0_123] : memref<16x16x128xf32, #tpu.memory_space<vmem>>, vector<1x16x128xf32>
    %157 = vector.shape_cast %156 : vector<1x16x128xf32> to vector<16x128xf32>
    %c2_124 = arith.constant 2 : index
    %c0_125 = arith.constant 0 : index
    %c0_126 = arith.constant 0 : index
    %158 = vector.load %arg4[%c2_124, %c0_125, %c0_126] : memref<16x16x128xf32, #tpu.memory_space<vmem>>, vector<1x16x128xf32>
    %159 = vector.shape_cast %158 : vector<1x16x128xf32> to vector<16x128xf32>
    %160 = arith.maximumf %157, %159 : vector<16x128xf32>
    %cst_127 = arith.constant -0.153093114 : f32
    %161 = vector.broadcast %cst_127 : f32 to vector<16x128xf32>
    %162 = arith.mulf %161, %160 : vector<16x128xf32>
    %163 = arith.addf %155, %162 : vector<16x128xf32>
    %cst_128 = arith.constant -0.153093114 : f32
    %164 = vector.broadcast %cst_128 : f32 to vector<16x128xf32>
    %165 = arith.mulf %164, %160 : vector<16x128xf32>
    %c2_129 = arith.constant 2 : index
    %c0_130 = arith.constant 0 : index
    %c0_131 = arith.constant 0 : index
    %166 = vector.load %arg4[%c2_129, %c0_130, %c0_131] : memref<16x16x128xf32, #tpu.memory_space<vmem>>, vector<1x16x128xf32>
    %167 = vector.shape_cast %166 : vector<1x16x128xf32> to vector<16x128xf32>
    %c3_132 = arith.constant 3 : index
    %c0_133 = arith.constant 0 : index
    %c0_134 = arith.constant 0 : index
    %168 = vector.load %arg4[%c3_132, %c0_133, %c0_134] : memref<16x16x128xf32, #tpu.memory_space<vmem>>, vector<1x16x128xf32>
    %169 = vector.shape_cast %168 : vector<1x16x128xf32> to vector<16x128xf32>
    %170 = arith.maximumf %167, %169 : vector<16x128xf32>
    %cst_135 = arith.constant -0.306186229 : f32
    %171 = vector.broadcast %cst_135 : f32 to vector<16x128xf32>
    %172 = arith.mulf %171, %170 : vector<16x128xf32>
    %173 = arith.addf %165, %172 : vector<16x128xf32>
    %c3_136 = arith.constant 3 : index
    %c0_137 = arith.constant 0 : index
    %c0_138 = arith.constant 0 : index
    %174 = vector.load %arg4[%c3_136, %c0_137, %c0_138] : memref<16x16x128xf32, #tpu.memory_space<vmem>>, vector<1x16x128xf32>
    %175 = vector.shape_cast %174 : vector<1x16x128xf32> to vector<16x128xf32>
    %c4_139 = arith.constant 4 : index
    %c0_140 = arith.constant 0 : index
    %c0_141 = arith.constant 0 : index
    %176 = vector.load %arg4[%c4_139, %c0_140, %c0_141] : memref<16x16x128xf32, #tpu.memory_space<vmem>>, vector<1x16x128xf32>
    %177 = vector.shape_cast %176 : vector<1x16x128xf32> to vector<16x128xf32>
    %178 = arith.maximumf %175, %177 : vector<16x128xf32>
    %cst_142 = arith.constant -0.153093114 : f32
    %179 = vector.broadcast %cst_142 : f32 to vector<16x128xf32>
    %180 = arith.mulf %179, %178 : vector<16x128xf32>
    %181 = arith.addf %173, %180 : vector<16x128xf32>
    %cst_143 = arith.constant -0.153093114 : f32
    %182 = vector.broadcast %cst_143 : f32 to vector<16x128xf32>
    %183 = arith.mulf %182, %178 : vector<16x128xf32>
    %c4_144 = arith.constant 4 : index
    %c0_145 = arith.constant 0 : index
    %c0_146 = arith.constant 0 : index
    %184 = vector.load %arg4[%c4_144, %c0_145, %c0_146] : memref<16x16x128xf32, #tpu.memory_space<vmem>>, vector<1x16x128xf32>
    %185 = vector.shape_cast %184 : vector<1x16x128xf32> to vector<16x128xf32>
    %c5_147 = arith.constant 5 : index
    %c0_148 = arith.constant 0 : index
    %c0_149 = arith.constant 0 : index
    %186 = vector.load %arg4[%c5_147, %c0_148, %c0_149] : memref<16x16x128xf32, #tpu.memory_space<vmem>>, vector<1x16x128xf32>
    %187 = vector.shape_cast %186 : vector<1x16x128xf32> to vector<16x128xf32>
    %188 = arith.maximumf %185, %187 : vector<16x128xf32>
    %cst_150 = arith.constant -0.306186229 : f32
    %189 = vector.broadcast %cst_150 : f32 to vector<16x128xf32>
    %190 = arith.mulf %189, %188 : vector<16x128xf32>
    %191 = arith.addf %183, %190 : vector<16x128xf32>
    %c5_151 = arith.constant 5 : index
    %c0_152 = arith.constant 0 : index
    %c0_153 = arith.constant 0 : index
    %192 = vector.load %arg4[%c5_151, %c0_152, %c0_153] : memref<16x16x128xf32, #tpu.memory_space<vmem>>, vector<1x16x128xf32>
    %193 = vector.shape_cast %192 : vector<1x16x128xf32> to vector<16x128xf32>
    %c6_154 = arith.constant 6 : index
    %c0_155 = arith.constant 0 : index
    %c0_156 = arith.constant 0 : index
    %194 = vector.load %arg4[%c6_154, %c0_155, %c0_156] : memref<16x16x128xf32, #tpu.memory_space<vmem>>, vector<1x16x128xf32>
    %195 = vector.shape_cast %194 : vector<1x16x128xf32> to vector<16x128xf32>
    %196 = arith.maximumf %193, %195 : vector<16x128xf32>
    %cst_157 = arith.constant -0.153093114 : f32
    %197 = vector.broadcast %cst_157 : f32 to vector<16x128xf32>
    %198 = arith.mulf %197, %196 : vector<16x128xf32>
    %199 = arith.addf %191, %198 : vector<16x128xf32>
    %cst_158 = arith.constant -0.153093114 : f32
    %200 = vector.broadcast %cst_158 : f32 to vector<16x128xf32>
    %201 = arith.mulf %200, %196 : vector<16x128xf32>
    %c6_159 = arith.constant 6 : index
    %c0_160 = arith.constant 0 : index
    %c0_161 = arith.constant 0 : index
    %202 = vector.load %arg4[%c6_159, %c0_160, %c0_161] : memref<16x16x128xf32, #tpu.memory_space<vmem>>, vector<1x16x128xf32>
    %203 = vector.shape_cast %202 : vector<1x16x128xf32> to vector<16x128xf32>
    %c7_162 = arith.constant 7 : index
    %c0_163 = arith.constant 0 : index
    %c0_164 = arith.constant 0 : index
    %204 = vector.load %arg4[%c7_162, %c0_163, %c0_164] : memref<16x16x128xf32, #tpu.memory_space<vmem>>, vector<1x16x128xf32>
    %205 = vector.shape_cast %204 : vector<1x16x128xf32> to vector<16x128xf32>
    %206 = arith.maximumf %203, %205 : vector<16x128xf32>
    %cst_165 = arith.constant -0.306186229 : f32
    %207 = vector.broadcast %cst_165 : f32 to vector<16x128xf32>
    %208 = arith.mulf %207, %206 : vector<16x128xf32>
    %209 = arith.addf %201, %208 : vector<16x128xf32>
    %c7_166 = arith.constant 7 : index
    %c0_167 = arith.constant 0 : index
    %c0_168 = arith.constant 0 : index
    %210 = vector.load %arg4[%c7_166, %c0_167, %c0_168] : memref<16x16x128xf32, #tpu.memory_space<vmem>>, vector<1x16x128xf32>
    %211 = vector.shape_cast %210 : vector<1x16x128xf32> to vector<16x128xf32>
    %c8_169 = arith.constant 8 : index
    %c0_170 = arith.constant 0 : index
    %c0_171 = arith.constant 0 : index
    %212 = vector.load %arg4[%c8_169, %c0_170, %c0_171] : memref<16x16x128xf32, #tpu.memory_space<vmem>>, vector<1x16x128xf32>
    %213 = vector.shape_cast %212 : vector<1x16x128xf32> to vector<16x128xf32>
    %214 = arith.maximumf %211, %213 : vector<16x128xf32>
    %cst_172 = arith.constant -0.153093114 : f32
    %215 = vector.broadcast %cst_172 : f32 to vector<16x128xf32>
    %216 = arith.mulf %215, %214 : vector<16x128xf32>
    %217 = arith.addf %209, %216 : vector<16x128xf32>
    %cst_173 = arith.constant -0.153093114 : f32
    %218 = vector.broadcast %cst_173 : f32 to vector<16x128xf32>
    %219 = arith.mulf %218, %214 : vector<16x128xf32>
    %c8_174 = arith.constant 8 : index
    %c0_175 = arith.constant 0 : index
    %c0_176 = arith.constant 0 : index
    %220 = vector.load %arg4[%c8_174, %c0_175, %c0_176] : memref<16x16x128xf32, #tpu.memory_space<vmem>>, vector<1x16x128xf32>
    %221 = vector.shape_cast %220 : vector<1x16x128xf32> to vector<16x128xf32>
    %c9_177 = arith.constant 9 : index
    %c0_178 = arith.constant 0 : index
    %c0_179 = arith.constant 0 : index
    %222 = vector.load %arg4[%c9_177, %c0_178, %c0_179] : memref<16x16x128xf32, #tpu.memory_space<vmem>>, vector<1x16x128xf32>
    %223 = vector.shape_cast %222 : vector<1x16x128xf32> to vector<16x128xf32>
    %224 = arith.maximumf %221, %223 : vector<16x128xf32>
    %cst_180 = arith.constant -0.306186229 : f32
    %225 = vector.broadcast %cst_180 : f32 to vector<16x128xf32>
    %226 = arith.mulf %225, %224 : vector<16x128xf32>
    %227 = arith.addf %219, %226 : vector<16x128xf32>
    %c9_181 = arith.constant 9 : index
    %c0_182 = arith.constant 0 : index
    %c0_183 = arith.constant 0 : index
    %228 = vector.load %arg4[%c9_181, %c0_182, %c0_183] : memref<16x16x128xf32, #tpu.memory_space<vmem>>, vector<1x16x128xf32>
    %229 = vector.shape_cast %228 : vector<1x16x128xf32> to vector<16x128xf32>
    %c10_184 = arith.constant 10 : index
    %c0_185 = arith.constant 0 : index
    %c0_186 = arith.constant 0 : index
    %230 = vector.load %arg4[%c10_184, %c0_185, %c0_186] : memref<16x16x128xf32, #tpu.memory_space<vmem>>, vector<1x16x128xf32>
    %231 = vector.shape_cast %230 : vector<1x16x128xf32> to vector<16x128xf32>
    %232 = arith.maximumf %229, %231 : vector<16x128xf32>
    %cst_187 = arith.constant -0.153093114 : f32
    %233 = vector.broadcast %cst_187 : f32 to vector<16x128xf32>
    %234 = arith.mulf %233, %232 : vector<16x128xf32>
    %235 = arith.addf %227, %234 : vector<16x128xf32>
    %cst_188 = arith.constant -0.153093114 : f32
    %236 = vector.broadcast %cst_188 : f32 to vector<16x128xf32>
    %237 = arith.mulf %236, %232 : vector<16x128xf32>
    %c10_189 = arith.constant 10 : index
    %c0_190 = arith.constant 0 : index
    %c0_191 = arith.constant 0 : index
    %238 = vector.load %arg4[%c10_189, %c0_190, %c0_191] : memref<16x16x128xf32, #tpu.memory_space<vmem>>, vector<1x16x128xf32>
    %239 = vector.shape_cast %238 : vector<1x16x128xf32> to vector<16x128xf32>
    %c11_192 = arith.constant 11 : index
    %c0_193 = arith.constant 0 : index
    %c0_194 = arith.constant 0 : index
    %240 = vector.load %arg4[%c11_192, %c0_193, %c0_194] : memref<16x16x128xf32, #tpu.memory_space<vmem>>, vector<1x16x128xf32>
    %241 = vector.shape_cast %240 : vector<1x16x128xf32> to vector<16x128xf32>
    %242 = arith.maximumf %239, %241 : vector<16x128xf32>
    %cst_195 = arith.constant -0.306186229 : f32
    %243 = vector.broadcast %cst_195 : f32 to vector<16x128xf32>
    %244 = arith.mulf %243, %242 : vector<16x128xf32>
    %245 = arith.addf %237, %244 : vector<16x128xf32>
    %c11_196 = arith.constant 11 : index
    %c0_197 = arith.constant 0 : index
    %c0_198 = arith.constant 0 : index
    %246 = vector.load %arg4[%c11_196, %c0_197, %c0_198] : memref<16x16x128xf32, #tpu.memory_space<vmem>>, vector<1x16x128xf32>
    %247 = vector.shape_cast %246 : vector<1x16x128xf32> to vector<16x128xf32>
    %c12_199 = arith.constant 12 : index
    %c0_200 = arith.constant 0 : index
    %c0_201 = arith.constant 0 : index
    %248 = vector.load %arg4[%c12_199, %c0_200, %c0_201] : memref<16x16x128xf32, #tpu.memory_space<vmem>>, vector<1x16x128xf32>
    %249 = vector.shape_cast %248 : vector<1x16x128xf32> to vector<16x128xf32>
    %250 = arith.maximumf %247, %249 : vector<16x128xf32>
    %cst_202 = arith.constant -0.153093114 : f32
    %251 = vector.broadcast %cst_202 : f32 to vector<16x128xf32>
    %252 = arith.mulf %251, %250 : vector<16x128xf32>
    %253 = arith.addf %245, %252 : vector<16x128xf32>
    %cst_203 = arith.constant -0.153093114 : f32
    %254 = vector.broadcast %cst_203 : f32 to vector<16x128xf32>
    %255 = arith.mulf %254, %250 : vector<16x128xf32>
    %c12_204 = arith.constant 12 : index
    %c0_205 = arith.constant 0 : index
    %c0_206 = arith.constant 0 : index
    %256 = vector.load %arg4[%c12_204, %c0_205, %c0_206] : memref<16x16x128xf32, #tpu.memory_space<vmem>>, vector<1x16x128xf32>
    %257 = vector.shape_cast %256 : vector<1x16x128xf32> to vector<16x128xf32>
    %c13_207 = arith.constant 13 : index
    %c0_208 = arith.constant 0 : index
    %c0_209 = arith.constant 0 : index
    %258 = vector.load %arg4[%c13_207, %c0_208, %c0_209] : memref<16x16x128xf32, #tpu.memory_space<vmem>>, vector<1x16x128xf32>
    %259 = vector.shape_cast %258 : vector<1x16x128xf32> to vector<16x128xf32>
    %260 = arith.maximumf %257, %259 : vector<16x128xf32>
    %cst_210 = arith.constant -0.306186229 : f32
    %261 = vector.broadcast %cst_210 : f32 to vector<16x128xf32>
    %262 = arith.mulf %261, %260 : vector<16x128xf32>
    %263 = arith.addf %255, %262 : vector<16x128xf32>
    %c13_211 = arith.constant 13 : index
    %c0_212 = arith.constant 0 : index
    %c0_213 = arith.constant 0 : index
    %264 = vector.load %arg4[%c13_211, %c0_212, %c0_213] : memref<16x16x128xf32, #tpu.memory_space<vmem>>, vector<1x16x128xf32>
    %265 = vector.shape_cast %264 : vector<1x16x128xf32> to vector<16x128xf32>
    %c14_214 = arith.constant 14 : index
    %c0_215 = arith.constant 0 : index
    %c0_216 = arith.constant 0 : index
    %266 = vector.load %arg4[%c14_214, %c0_215, %c0_216] : memref<16x16x128xf32, #tpu.memory_space<vmem>>, vector<1x16x128xf32>
    %267 = vector.shape_cast %266 : vector<1x16x128xf32> to vector<16x128xf32>
    %268 = arith.maximumf %265, %267 : vector<16x128xf32>
    %cst_217 = arith.constant -0.153093114 : f32
    %269 = vector.broadcast %cst_217 : f32 to vector<16x128xf32>
    %270 = arith.mulf %269, %268 : vector<16x128xf32>
    %271 = arith.addf %263, %270 : vector<16x128xf32>
    %cst_218 = arith.constant -0.153093114 : f32
    %272 = vector.broadcast %cst_218 : f32 to vector<16x128xf32>
    %273 = arith.mulf %272, %268 : vector<16x128xf32>
    %c14_219 = arith.constant 14 : index
    %c0_220 = arith.constant 0 : index
    %c0_221 = arith.constant 0 : index
    %274 = vector.load %arg4[%c14_219, %c0_220, %c0_221] : memref<16x16x128xf32, #tpu.memory_space<vmem>>, vector<1x16x128xf32>
    %275 = vector.shape_cast %274 : vector<1x16x128xf32> to vector<16x128xf32>
    %c15_222 = arith.constant 15 : index
    %c0_223 = arith.constant 0 : index
    %c0_224 = arith.constant 0 : index
    %276 = vector.load %arg4[%c15_222, %c0_223, %c0_224] : memref<16x16x128xf32, #tpu.memory_space<vmem>>, vector<1x16x128xf32>
    %277 = vector.shape_cast %276 : vector<1x16x128xf32> to vector<16x128xf32>
    %278 = arith.maximumf %275, %277 : vector<16x128xf32>
    %cst_225 = arith.constant -0.306186229 : f32
    %279 = vector.broadcast %cst_225 : f32 to vector<16x128xf32>
    %280 = arith.mulf %279, %278 : vector<16x128xf32>
    %281 = arith.addf %273, %280 : vector<16x128xf32>
    %282 = tpu.concatenate %163, %181, %199, %217, %235, %253, %271, %281 in 1 : vector<16x128xf32>, vector<16x128xf32>, vector<16x128xf32>, vector<16x128xf32>, vector<16x128xf32>, vector<16x128xf32>, vector<16x128xf32>, vector<16x128xf32> -> vector<16x1024xf32>
    %cst_226 = arith.constant dense<0.000000e+00> : vector<8x1024xf32>
    %283 = tpu.matmul %148, %282, %cst_226 {dimension_numbers = #tpu.dot_dimension_numbers<[1], [0], [0], [1], [0, 0, 1, 1], [], []>, precision = #tpu.contract_precision<fp32>} : vector<8x16xf32>, vector<16x1024xf32>, vector<8x1024xf32> -> vector<8x1024xf32>
    %284 = vector.extract_strided_slice %283 {offsets = [0, 0], sizes = [8, 128], strides = [1, 1]} : vector<8x1024xf32> to vector<8x128xf32>
    %c0_227 = arith.constant 0 : index
    %c0_228 = arith.constant 0 : index
    %c0_229 = arith.constant 0 : index
    %285 = vector.load %arg3[%c0_227, %c0_228, %c0_229] : memref<8x8x128xf32, #tpu.memory_space<vmem>>, vector<1x8x128xf32>
    %286 = vector.shape_cast %285 : vector<1x8x128xf32> to vector<8x128xf32>
    %287 = vector.shape_cast %284 : vector<8x128xf32> to vector<1x8x128xf32>
    tpu.vector_store %arg3[%c0_227, %c0_228, %c0_229], %287 {strides = array<i32>} : memref<8x8x128xf32, #tpu.memory_space<vmem>>, vector<1x8x128xf32>,
    %288 = vector.extract_strided_slice %283 {offsets = [0, 128], sizes = [8, 128], strides = [1, 1]} : vector<8x1024xf32> to vector<8x128xf32>
    %c1_230 = arith.constant 1 : index
    %c0_231 = arith.constant 0 : index
    %c0_232 = arith.constant 0 : index
    %289 = vector.load %arg3[%c1_230, %c0_231, %c0_232] : memref<8x8x128xf32, #tpu.memory_space<vmem>>, vector<1x8x128xf32>
    %290 = vector.shape_cast %289 : vector<1x8x128xf32> to vector<8x128xf32>
    %291 = vector.shape_cast %288 : vector<8x128xf32> to vector<1x8x128xf32>
    tpu.vector_store %arg3[%c1_230, %c0_231, %c0_232], %291 {strides = array<i32>} : memref<8x8x128xf32, #tpu.memory_space<vmem>>, vector<1x8x128xf32>,
    %292 = vector.extract_strided_slice %283 {offsets = [0, 256], sizes = [8, 128], strides = [1, 1]} : vector<8x1024xf32> to vector<8x128xf32>
    %c2_233 = arith.constant 2 : index
    %c0_234 = arith.constant 0 : index
    %c0_235 = arith.constant 0 : index
    %293 = vector.load %arg3[%c2_233, %c0_234, %c0_235] : memref<8x8x128xf32, #tpu.memory_space<vmem>>, vector<1x8x128xf32>
    %294 = vector.shape_cast %293 : vector<1x8x128xf32> to vector<8x128xf32>
    %295 = vector.shape_cast %292 : vector<8x128xf32> to vector<1x8x128xf32>
    tpu.vector_store %arg3[%c2_233, %c0_234, %c0_235], %295 {strides = array<i32>} : memref<8x8x128xf32, #tpu.memory_space<vmem>>, vector<1x8x128xf32>,
    %296 = vector.extract_strided_slice %283 {offsets = [0, 384], sizes = [8, 128], strides = [1, 1]} : vector<8x1024xf32> to vector<8x128xf32>
    %c3_236 = arith.constant 3 : index
    %c0_237 = arith.constant 0 : index
    %c0_238 = arith.constant 0 : index
    %297 = vector.load %arg3[%c3_236, %c0_237, %c0_238] : memref<8x8x128xf32, #tpu.memory_space<vmem>>, vector<1x8x128xf32>
    %298 = vector.shape_cast %297 : vector<1x8x128xf32> to vector<8x128xf32>
    %299 = vector.shape_cast %296 : vector<8x128xf32> to vector<1x8x128xf32>
    tpu.vector_store %arg3[%c3_236, %c0_237, %c0_238], %299 {strides = array<i32>} : memref<8x8x128xf32, #tpu.memory_space<vmem>>, vector<1x8x128xf32>,
    %300 = vector.extract_strided_slice %283 {offsets = [0, 512], sizes = [8, 128], strides = [1, 1]} : vector<8x1024xf32> to vector<8x128xf32>
    %c4_239 = arith.constant 4 : index
    %c0_240 = arith.constant 0 : index
    %c0_241 = arith.constant 0 : index
    %301 = vector.load %arg3[%c4_239, %c0_240, %c0_241] : memref<8x8x128xf32, #tpu.memory_space<vmem>>, vector<1x8x128xf32>
    %302 = vector.shape_cast %301 : vector<1x8x128xf32> to vector<8x128xf32>
    %303 = vector.shape_cast %300 : vector<8x128xf32> to vector<1x8x128xf32>
    tpu.vector_store %arg3[%c4_239, %c0_240, %c0_241], %303 {strides = array<i32>} : memref<8x8x128xf32, #tpu.memory_space<vmem>>, vector<1x8x128xf32>,
    %304 = vector.extract_strided_slice %283 {offsets = [0, 640], sizes = [8, 128], strides = [1, 1]} : vector<8x1024xf32> to vector<8x128xf32>
    %c5_242 = arith.constant 5 : index
    %c0_243 = arith.constant 0 : index
    %c0_244 = arith.constant 0 : index
    %305 = vector.load %arg3[%c5_242, %c0_243, %c0_244] : memref<8x8x128xf32, #tpu.memory_space<vmem>>, vector<1x8x128xf32>
    %306 = vector.shape_cast %305 : vector<1x8x128xf32> to vector<8x128xf32>
    %307 = vector.shape_cast %304 : vector<8x128xf32> to vector<1x8x128xf32>
    tpu.vector_store %arg3[%c5_242, %c0_243, %c0_244], %307 {strides = array<i32>} : memref<8x8x128xf32, #tpu.memory_space<vmem>>, vector<1x8x128xf32>,
    %308 = vector.extract_strided_slice %283 {offsets = [0, 768], sizes = [8, 128], strides = [1, 1]} : vector<8x1024xf32> to vector<8x128xf32>
    %c6_245 = arith.constant 6 : index
    %c0_246 = arith.constant 0 : index
    %c0_247 = arith.constant 0 : index
    %309 = vector.load %arg3[%c6_245, %c0_246, %c0_247] : memref<8x8x128xf32, #tpu.memory_space<vmem>>, vector<1x8x128xf32>
    %310 = vector.shape_cast %309 : vector<1x8x128xf32> to vector<8x128xf32>
    %311 = vector.shape_cast %308 : vector<8x128xf32> to vector<1x8x128xf32>
    tpu.vector_store %arg3[%c6_245, %c0_246, %c0_247], %311 {strides = array<i32>} : memref<8x8x128xf32, #tpu.memory_space<vmem>>, vector<1x8x128xf32>,
    %312 = vector.extract_strided_slice %283 {offsets = [0, 896], sizes = [8, 128], strides = [1, 1]} : vector<8x1024xf32> to vector<8x128xf32>
    %c7_248 = arith.constant 7 : index
    %c0_249 = arith.constant 0 : index
    %c0_250 = arith.constant 0 : index
    %313 = vector.load %arg3[%c7_248, %c0_249, %c0_250] : memref<8x8x128xf32, #tpu.memory_space<vmem>>, vector<1x8x128xf32>
    %314 = vector.shape_cast %313 : vector<1x8x128xf32> to vector<8x128xf32>
    %315 = vector.shape_cast %312 : vector<8x128xf32> to vector<1x8x128xf32>
    tpu.vector_store %arg3[%c7_248, %c0_249, %c0_250], %315 {strides = array<i32>} : memref<8x8x128xf32, #tpu.memory_space<vmem>>, vector<1x8x128xf32>,
    return
  }
  func.func @transform_0(%arg0: i32) -> (i32, i32, i32) {
    %c0_i32 = arith.constant 0 : i32
    %c0_i32_0 = arith.constant 0 : i32
    %c0_i32_1 = arith.constant 0 : i32
    return %c0_i32, %c0_i32_0, %arg0 : i32, i32, i32
  }
  func.func @transform_1(%arg0: i32) -> (i32, i32, i32) {
    %c0_i32 = arith.constant 0 : i32
    %c0_i32_0 = arith.constant 0 : i32
    %c0_i32_1 = arith.constant 0 : i32
    %c0_i32_2 = arith.constant 0 : i32
    return %c0_i32, %c0_i32_0, %c0_i32_1 : i32, i32, i32
  }
  func.func @transform_2(%arg0: i32) -> (i32, i32, i32) {
    %c0_i32 = arith.constant 0 : i32
    %c0_i32_0 = arith.constant 0 : i32
    %c0_i32_1 = arith.constant 0 : i32
    return %c0_i32, %c0_i32_0, %arg0 : i32, i32, i32
  }
}

</mosaic_0001>

<bundles_post_ra>
// kernel: tpu_custom_call.1
= control target key start
LH: loop header
LB: loop body
LE: loop exit
PB: predicated region body
PF: predicated region fallthrough
CT: control target
= control target key end

     0   :  { %7 = vsyncpa [#allocation4], 0  ;;  %s3635_s0 = inlined_call_operand.hbm [shape: f32[16,16,256], index: 0, kind: input, shape index: {}]   ;;  %s3636_s1 = inlined_call_operand.hbm [shape: f32[1,8,16], index: 1, kind: input, shape index: {}]   ;;  %s3637_s2 = inlined_call_operand.hbm [shape: f32[8,8,256], index: 2, kind: output, shape index: {}]  }
   0x1   :  { %9 = vsyncpa [#allocation4 + $0x1], 0 }
   0x2   :  { %10 = vsyncpa [#allocation7], 0 }
   0x3   :  { %11 = vsyncpa [#allocation5], 0 }
   0x4   :  { %13 = vsyncpa [#allocation5 + $0x1], 0  ;;  %s3008_s9 = smov 0   ;;  %s3010_s10 = smov 0  }
   0x5   :  { %s3012_s11 = smov 0   ;;  %s3014_s12 = smov 0  }
   0x6 LB: > { %s3029_s13 = sadd.s32 4294967295, %s2981_s12   ;;  %s2602_s14 = sadd.s32 4294967294, %s2981_s12   ;;  %s2981_s12 = sphi %s3014_s12, %s3662_s12   ;;  %s2977_s11 = sphi %s3012_s11, %s3661_s11   ;;  %s2973_s10 = sphi %s3010_s10, %s3660_s10   ;;  %s2969_s9 = sphi %s3008_s9, %s3659_s9  }
   0x7   : > { %s3033_s15 = sadd.s32 1, %s2981_s12   ;;  %s26_s16 = sadd.s32 1, %s2977_s11 }
   0x8   : > { %s23_s17 = ssub.s32 %s2981_s12, %s3033_s15  ;;  %p33_p0 = scmp.ne.s32.totalorder %s2977_s11, %s2973_s10 }
   0x9   : > { %p24_p1 = scmp.eq.s32.totalorder %s23_s17, 0  ;;  %p34_p2 = scmp.eq.s32.totalorder %s2981_s12, 0 }
   0xa   : > { %p39_p3 = scmp.ne.s32.totalorder %s2973_s10, %s2969_s9  ;;  %p3638_p4 = scmp.eq.s32.totalorder %s3029_s13, 0 }
   0xb   : > { %s3045_s18 = scalar_select %p24_p1, %s2977_s11, %s26_s16  }
   0xc   : > { %p3047_p5 = por %p34_p2, %p33_p0  ;;  %p3053_p6 = por %p3638_p4, %p39_p3 }
   0xd   : > { %p84_p7 = scmp.eq.s32.totalorder %s3029_s13, 1  ;;  %p90_p8 = scmp.eq.s32.totalorder %s2602_s14, 1 }
   0xe   : > { %s3644_s20 = scalar_select %p3053_p6, 1, 0 }
   0xf   : > { %p2603_p9 = scmp.ge.s32.totalorder %s2981_s12, 1  ;;  %p97_p10 = scmp.lt.s32.totalorder %s2981_s12, 3 }
  0x10   : > { %p3060_p11 = por %p84_p7, %p33_p0  ;;  %p3064_p12 = por %p90_p8, %p39_p3 }
  0x11   : > { %p3068_p13 = pnand %p2603_p9, %p97_p10  ;;  %s2983_s24 = smov [#allocation6]  }
  0x12   : > { %s3645_s21 = scalar_select %p3060_p11, 1, 0 }
  0x13   : > { %s3646_s22 = scalar_select %p3064_p12, 1, 0 }
  0x14   : > { %s3647_s23 = scalar_select %p3068_p13, 1, 0 }
  0x15   : > { %p2797_p2 = pneg %p3068_p13  ;;  %s110_s25 = sshll.u32 %s2983_s24, 4  ;;  %s111_s25 = int_to_ptr.vmem [resolvable:$true] %s110_s25 }
  0x16   : > { %p2810_p4 = scmp.lt.s32.totalorder %s2981_s12, 2  ;;  %p3648_p0 = scmp.eq.s32.totalorder %s3029_s13, 0 }
  0x17   : > { %s121_s27 = sand.u32 1, %s2977_s11   ;;  %s2853_s4 = scalar_lea.hbm %s3636_s1, 128 }
  0x18   : > { %p3078_p7 = pnand %p2797_p2, %p3648_p0  ;;  %p3085_p3 = pnand %p2810_p4, %p3047_p5 }
  0x19   : > { %s2606_s29 = sshll.u32 %s121_s27, 8  ;;  %p2854_p8 = scmp.ne.s32.totalorder %s3636_s1, %s2853_s4 }
  0x1a   : > { %s3650_s28 = scalar_select %p3085_p3, 1, 0 }
  0x1b   : > { %p2855_p9 = pneg %p3078_p7  ;;  %p2860_p4 = scmp.lt.u32.totalorder %s2853_s4, %s3636_s1 }
  0x1d   : > { %p2856_p10 = pnand %p2855_p9, %p2854_p8 }
  0x1f   : > { %p2857_p2 = pneg %p2856_p10 }
  0x21   : > { %p2862_p5 = pnand %p2860_p4, %p2857_p2 }
  0x23   : > { %2865 = shalt.err (!%p2862_p5)
}
  0x24   : > { %s2866_s14 = scalar_lea.vmem %s111_s25, 128  ;;  %p2874_p11 = scmp.lt.s32.totalorder %s111_s25, %s111_s25 }
  0x25   : > { %p2867_p0 = scmp.ne.s32.totalorder %s111_s25, %s2866_s14  ;;  %p2875_p6 = scmp.lt.s32.totalorder %s2866_s14, %s2866_s14 }
  0x27   : > { %p2869_p1 = pnand %p2867_p0, %p2855_p9  ;;  %p2876_p13 = por %p2875_p6, %p2874_p11 }
  0x29   : > { %p2870_p12 = pneg %p2869_p1 }
  0x2b   : > { %p2877_p3 = pnand %p2876_p13, %p2870_p12 }
  0x2d   : > { %2880 = shalt.err (!%p2877_p3)
}
  0x2e   : > { %2800 = dma.hbm_to_vmem [thread:$0]  (!%p3078_p7), %s3636_s1, 128, %s111_s25, [#allocation7]  }
  0x2f   : > { %s2607_s19 = sshll.u32 %s2981_s12, 7  ;;  %s125_s24 = scalar_lea.vmem [#allocation3], %s2606_s29 }
  0x30   : > { %s131_s30 = sshll.u32 %s125_s24, 4  ;;  %s3109_s5 = scalar_lea.hbm %s3635_s0, %s2607_s19  ;;  %s3111_s30 = int_to_ptr.vmem [resolvable:$true] %s131_s30 }
  0x31   : > { %s3113_s26 = scalar_lea.sflag [#allocation4], %s121_s27  ;;  %s2881_s6 = scalar_lea.hbm %s3109_s5, 4096 }
  0x32   : > { %p2882_p6 = scmp.ne.s32.totalorder %s3109_s5, %s2881_s6  ;;  %p3651_p11 = scmp.ne.s32.totalorder %s3650_s28, 0 }
  0x33   : > { %s2886_s7 = scalar_lea.hbm %s3635_s0, 8192  ;;  %p2887_p7 = scmp.lt.u32.totalorder %s3109_s5, %s3635_s0 }
  0x34   : > { %p2883_p12 = pneg %p3651_p11  ;;  %p2888_p3 = scmp.lt.u32.totalorder %s2886_s7, %s2881_s6 }
  0x35   : > { %p2890_p9 = scmp.lt.u32.totalorder %s2881_s6, %s3109_s5 }
  0x36   : > { %p2884_p13 = pnand %p2883_p12, %p2882_p6  ;;  %p2889_p8 = por %p2888_p3, %p2887_p7 }
  0x38   : > { %p2885_p1 = pneg %p2884_p13  ;;  %p2891_p10 = por %p2890_p9, %p2889_p8 }
  0x3a   : > { %p2892_p2 = pnand %p2891_p10, %p2885_p1 }
  0x3c   : > { %2895 = shalt.err (!%p2892_p2)
}
  0x3d   : > { %s2896_s27 = scalar_lea.vmem %s3111_s30, 4096  ;;  %s2984_s16 = smov [#allocation3]  }
  0x3e   : > { %p2897_p4 = scmp.ne.s32.totalorder %s3111_s30, %s2896_s27  ;;  %s2901_s17 = sshll.u32 %s2984_s16, 4  ;;  %s2902_s17 = int_to_ptr.vmem [resolvable:$false] %s2901_s17 }
  0x3f   : > { %s2903_s19 = scalar_lea.vmem %s2902_s17, 8192  ;;  %p2904_p6 = scmp.lt.s32.totalorder %s3111_s30, %s2902_s17 }
  0x40   : > { %p2899_p5 = pnand %p2897_p4, %p2883_p12  ;;  %p2905_p13 = scmp.lt.s32.totalorder %s2903_s19, %s2896_s27 }
  0x42   : > { %p2900_p0 = pneg %p2899_p5  ;;  %p2906_p7 = por %p2905_p13, %p2904_p6 }
  0x44   : > { %p2907_p3 = pnand %p2906_p7, %p2900_p0 }
  0x46   : > { %2910 = shalt.err (!%p2907_p3)
}
  0x47   : > { %s2985_s24 = smov 256   ;;  %s2986_s3 = smov 128  }
  0x48   : > { %s2987_s4 = smov 8   ;;  %p3652_p12 = scmp.ne.s32.totalorder %s3647_s23, 0 }
  0x49   : > { %2804 = dma.hbm_to_vmem [thread:$0]  (!%p3651_p11), %s3109_s5, 4096, %s3111_s30, %s3113_s26, %s2985_s24, %s2986_s3, %s2987_s4  }
  0x4a   : > { %143 = sbr.rel (%p3652_p12) target bundleno = 445 (0x1bd), region = 28  ;;  %s3144_s6 = sand.u32 (!%p3652_p12), 1, %s2973_s10  }
  0x4b   : > { %s2609_s25 = sshll.u32 (!%p3652_p12), %s3144_s6, 8  ;;  %s146_s29 = scalar_lea.sflag (!%p3652_p12), [#allocation4], %s3144_s6 }
  0x4c   : > { %s3148_s7 = scalar_lea.vmem (!%p3652_p12), [#allocation3], %s2609_s25  ;;  %p3653_p1 = scmp.ne.s32.totalorder (!%p3652_p12), %s3644_s20, 0 }
  0x51   : > { %2956 = dma.done.wait (%p3653_p1), %s146_s29, 4096  }
  0x52   : > { %2958 = vsyncadd (%p3653_p1), %s146_s29, 4294963200  ;;  %p3654_p11 = scmp.eq.s32.totalorder %s3029_s13, 0 }
  0x54   : > { %2960 = dma.done.wait (%p3654_p11), [#allocation7], 128   ;;  %p3655_p8 = pmov %p3654_p11 }
  0x55   : > { %v174_v0 = vlaneseq  ;;  %v2988_v1 = vmov 0.0   ;;  %v2612_v4 = vld [vmem:[%s3148_s7 + $0x10] sm:$0xff]  ;;  %v2613_v5 = vld [vmem:[%s3148_s7 + $0x18] sm:$0xff]  ;;  %v2614_v6 = vld [vmem:[%s3148_s7 + $0x20] sm:$0xff]  ;;  %vm523_vm2 = vcmask 130048   ;;  %s2611_s20 = sshll.u32 %s3144_s6, 6 }
  0x56   : > { %2962 = vsyncadd (%p3655_p8), [#allocation7], 4294967168  ;;  %595 = vmatprep.mubr.f32.mxu0 %v2988_v1  ;;  %1086 = vmatprep.mubr.f32.mxu1 %v2988_v1  ;;  %v195_v7 = vrot.slane %v2612_v4, 1  ;;  %v196_v8 = vrot.slane %v2613_v5, 1  ;;  %v2615_v9 = vld [vmem:[%s3148_s7 + $0x28] sm:$0xff]  ;;  %v209_v10 = vrot.slane %v2614_v6, 1 }
  0x57   : > { %v3160_v2 = vshrl.u32 %v174_v0, 7  ;;  %v2616_v11 = vld [vmem:[%s3148_s7 + $0x30] sm:$0xff]  ;;  %v2617_v12 = vld [vmem:[%s3148_s7 + $0x38] sm:$0xff]  ;;  %v210_v13 = vrot.slane %v2615_v9, 1  ;;  %v2618_v16 = vld [vmem:[%s3148_s7 + $0x40] sm:$0xff]  ;;  %s173_s23 = scalar_lea.vmem [#allocation8], %s2611_s20 }
  0x58   : > { %v223_v14 = vrot.slane %v2616_v11, 1  ;;  %v224_v15 = vrot.slane %v2617_v12, 1  ;;  %v2619_v17 = vld [vmem:[%s3148_s7 + $0x48] sm:$0xff]  ;;  %v237_v20 = vrot.slane %v2618_v16, 1  ;;  %v2620_v34 = vld [vmem:[%s3148_s7 + $0x50] sm:$0xff]  ;;  %v2621_v39 = vld [vmem:[%s3148_s7 + $0x58] sm:$0xff] }
  0x59   : > { %v3163_v3 = vadd.s32 8, %v3160_v2  ;;  %vm183_vm0 = vcmp.lt.s32.totalorder %v3160_v2, 7  ;;  %v238_v21 = vrot.slane %v2619_v17, 1  ;;  %v2622_v44 = vld [vmem:[%s3148_s7 + $0x60] sm:$0xff]  ;;  %v251_v48 = vrot.slane %v2620_v34, 1  ;;  %v2623_v49 = vld [vmem:[%s3148_s7 + $0x68] sm:$0xff] }
  0x5a   : > { %v197_v18 = vsel %vm183_vm0, %v195_v7, %v196_v8  ;;  %v198_v19 = vsel %vm183_vm0, %v196_v8, %v195_v7  ;;  %v211_v24 = vsel %vm183_vm0, %v209_v10, %v210_v13  ;;  %v212_v25 = vsel %vm183_vm0, %v210_v13, %v209_v10  ;;  %v2624_v58 = vld [vmem:[%s3148_s7 + $0x70] sm:$0xff]  ;;  %v2627_v7 = vld [vmem:[%s3148_s7 + $0x88] sm:$0xff]  ;;  %v2629_v13 = vld [vmem:[%s3148_s7 + $0x98] sm:$0xff]  ;;  %s2519_s28 = sshll.u32 %s173_s23, 4  ;;  %s2650_s30 = sshll.u32 %s3029_s13, 7  ;;  %s3586_s28 = int_to_ptr.vmem [resolvable:$true] %s2519_s28 }
  0x5b   : > { %vm178_vm1 = vcmp.lt.s32.totalorder %v3163_v3, 15  ;;  %v3179_v22 = vmax.f32 %v2612_v4, %v197_v18  ;;  %v200_v23 = vmax.f32 %v2613_v5, %v198_v19  ;;  %v213_v26 = vmax.f32 %v2614_v6, %v211_v24  ;;  %v2625_v5 = vld [vmem:[%s3148_s7 + $0x78] sm:$0xff]  ;;  %v2626_v6 = vld [vmem:[%s3148_s7 + $0x80] sm:$0xff]  ;;  %s3591_s8 = scalar_lea.hbm %s3637_s2, %s2650_s30  ;;  %s2507_s14 = scalar_lea.sflag [#allocation5], %s3144_s6 }
  0x5c   : > { %v214_v27 = vmax.f32 %v2615_v9, %v212_v25  ;;  %v225_v28 = vsel %vm183_vm0, %v223_v14, %v224_v15  ;;  %v226_v29 = vsel %vm183_vm0, %v224_v15, %v223_v14  ;;  %v239_v33 = vsel %vm183_vm0, %v237_v20, %v238_v21  ;;  %s2911_s13 = scalar_lea.vmem %s3586_s28, 1024  ;;  %p3656_p10 = scmp.ne.s32.totalorder %s3645_s21, 0 }
  0x5d   : > { %v3191_v30 = vsel %vm178_vm1, %v200_v23, 0.0  ;;  %v227_v31 = vmax.f32 %v2616_v11, %v225_v28  ;;  %v228_v32 = vmax.f32 %v2617_v12, %v226_v29  ;;  %v240_v36 = vsel %vm183_vm0, %v238_v21, %v237_v20  ;;  %v2628_v12 = vld [vmem:[%s3148_s7 + $0x90] sm:$0xff]  ;;  %p2912_p9 = scmp.ne.s32.totalorder %s3586_s28, %s2911_s13  ;;  %s2989_s27 = smov [#allocation8]  }
  0x5e   : > { %v216_v35 = vsel %vm178_vm1, %v214_v27, 0.0  ;;  %v3200_v37 = vmax.f32 %v2618_v16, %v239_v33  ;;  %v413_v38 = vmax.f32 %v3179_v22, %v213_v26  ;;  %v242_v41 = vmax.f32 %v2619_v17, %v240_v36  ;;  %s2915_s16 = sshll.u32 %s2989_s27, 4  ;;  %s2916_s16 = int_to_ptr.vmem [resolvable:$false] %s2915_s16 }
  0x5f   : > { %v230_v40 = vsel %vm178_vm1, %v228_v32, 0.0  ;;  %v414_v42 = vmax.f32 %v3191_v30, %v216_v35  ;;  %v421_v43 = vmax.f32 %v213_v26, %v227_v31  ;;  %v252_v53 = vrot.slane %v2621_v39, 1  ;;  %p2913_p2 = pnand %p2912_p9, %p3656_p10  ;;  %s2917_s17 = scalar_lea.vmem %s2916_s16, 2048 }
  0x60   : > { %v3208_v45 = vmul.f32 -0.15309311, %v413_v38  ;;  %v422_v46 = vmax.f32 %v216_v35, %v230_v40  ;;  %v429_v47 = vmax.f32 %v227_v31, %v3200_v37  ;;  %v3214_v50 = vsel %vm178_vm1, %v242_v41, 0.0  ;;  %p2918_p5 = scmp.lt.s32.totalorder %s3586_s28, %s2916_s16  ;;  %p2919_p0 = scmp.lt.s32.totalorder %s2917_s17, %s2911_s13 }
  0x61   : > { %v3216_v51 = vmul.f32 -0.15309311, %v414_v42  ;;  %v423_v52 = vmul.f32 -0.30618623, %v421_v43  ;;  %v430_v55 = vmax.f32 %v230_v40, %v3214_v50  ;;  %v265_v57 = vrot.slane %v2622_v44, 1  ;;  %p2914_p4 = pneg %p2913_p2 }
  0x62   : > { %v424_v54 = vmul.f32 -0.30618623, %v422_v46  ;;  %v3219_v56 = vmul.f32 -0.15309311, %v429_v47  ;;  %v253_v60 = vsel %vm183_vm0, %v251_v48, %v252_v53  ;;  %v254_v61 = vsel %vm183_vm0, %v252_v53, %v251_v48  ;;  %p2920_p6 = por %p2919_p0, %p2918_p5 }
  0x63   : > { %v425_v59 = vadd.f32 %v423_v52, %v3208_v45  ;;  %v266_v62 = vrot.slane %v2623_v49, 1  ;;  %v3228_v0 = vmul.f32 -0.15309311, %v430_v55  ;;  %v256_v4 = vmax.f32 %v2621_v39, %v254_v61 }
  0x64   : > { %v426_v63 = vadd.f32 %v424_v54, %v3216_v51  ;;  %v279_v11 = vrot.slane %v2624_v58, 1  ;;  %v3241_v15 = vmax.f32 %v2620_v34, %v253_v60  ;;  %v280_v19 = vrot.slane %v2625_v5, 1  ;;  %p2921_p13 = pnand %p2920_p6, %p2914_p4 }
  0x65   : > { %v433_v8 = vadd.f32 %v3219_v56, %v425_v59  ;;  %v267_v9 = vsel %vm183_vm0, %v265_v57, %v266_v62  ;;  %v268_v10 = vsel %vm183_vm0, %v266_v62, %v265_v57  ;;  %v3245_v16 = vsel %vm178_vm1, %v256_v4, 0.0  ;;  %v179_v57 = vld [vmem:[%s3148_s7] sm:$0xff] }
  0x66   : > { %v434_v14 = vadd.f32 %v3228_v0, %v426_v63  ;;  %v270_v17 = vmax.f32 %v2623_v49, %v268_v10  ;;  %v293_v20 = vrot.slane %v2626_v6, 1  ;;  %v294_v21 = vrot.slane %v2627_v7, 1 }
  0x67   : > { %v527_v18 = vand.u32 4294901760, %v433_v8  ;;  %v269_v24 = vmax.f32 %v2622_v44, %v267_v9  ;;  %v307_v25 = vrot.slane %v2628_v12, 1  ;;  %v308_v26 = vrot.slane %v2629_v13, 1 }
  0x68   : > { %v531_v23 = vand.u32 4294901760, %v434_v14  ;;  %v272_v27 = vsel %vm178_vm1, %v270_v17, 0.0  ;;  %v281_v28 = vsel %vm183_vm0, %v279_v11, %v280_v19  ;;  %v282_v29 = vsel %vm183_vm0, %v280_v19, %v279_v11 }
  0x69   : > { %v295_v31 = vsel %vm183_vm0, %v293_v20, %v294_v21  ;;  %v3257_v33 = vsub.f32 %v433_v8, %v527_v18  ;;  %v283_v34 = vmax.f32 %v2624_v58, %v281_v28  ;;  %v284_v35 = vmax.f32 %v2625_v5, %v282_v29  ;;  %v180_v58 = vld [vmem:[%s3148_s7 + $0x8] sm:$0xff] }
  0x6a   : > { %v3255_v32 = vpack.c.bf16 %v531_v23, %v527_v18  ;;  %v296_v36 = vsel %vm183_vm0, %v294_v21, %v293_v20  ;;  %v297_v38 = vmax.f32 %v2626_v6, %v295_v31  ;;  %v309_v39 = vsel %vm183_vm0, %v307_v25, %v308_v26  ;;  %v402_v18 = vld [vmem:[#allocation6] sm:$0xff] }
  0x6b   : > { %v310_v40 = vsel %vm183_vm0, %v308_v26, %v307_v25  ;;  %v286_v41 = vsel %vm178_vm1, %v284_v35, 0.0  ;;  %v298_v42 = vmax.f32 %v2627_v7, %v296_v36  ;;  %v3268_v43 = vmax.f32 %v2628_v12, %v309_v39 }
  0x6c   : > { %2654 = vmatprep.subr.bf16.mxu0 %v3255_v32  ;;  %v312_v44 = vmax.f32 %v2629_v13, %v310_v40  ;;  %v445_v46 = vmax.f32 %v3241_v15, %v269_v24  ;;  %v446_v47 = vmax.f32 %v3245_v16, %v272_v27  ;;  %v453_v48 = vmax.f32 %v269_v24, %v283_v34 }
  0x6d   : > { %v454_v49 = vmax.f32 %v272_v27, %v286_v41  ;;  %v300_v52 = vsel %vm178_vm1, %v298_v42, 0.0  ;;  %v461_v54 = vmax.f32 %v283_v34, %v297_v38  ;;  %v469_v55 = vmax.f32 %v297_v38, %v3268_v43 }
  0x6e   : > { %v3276_v53 = vsel %vm178_vm1, %v312_v44, 0.0  ;;  %v447_v59 = vmul.f32 -0.15309311, %v445_v46  ;;  %v448_v60 = vmul.f32 -0.15309311, %v446_v47  ;;  %v462_v62 = vmax.f32 %v286_v41, %v300_v52 }
  0x6f   : > { %v455_v61 = vmul.f32 -0.30618623, %v453_v48  ;;  %v456_v63 = vmul.f32 -0.30618623, %v454_v49  ;;  %v463_v4 = vmul.f32 -0.15309311, %v461_v54  ;;  %v470_v5 = vmax.f32 %v300_v52, %v3276_v53 }
  0x70   : > { %v471_v6 = vmul.f32 -0.30618623, %v469_v55  ;;  %v464_v8 = vmul.f32 -0.15309311, %v462_v62  ;;  %v181_v9 = vrot.slane %v179_v57, 1  ;;  %v182_v10 = vrot.slane %v180_v58, 1 }
  0x71   : > { %v457_v7 = vadd.f32 %v455_v61, %v447_v59  ;;  %v3282_v11 = vsub.f32 %v434_v14, %v531_v23  ;;  %v458_v12 = vadd.f32 %v456_v63, %v448_v60  ;;  %v472_v13 = vmul.f32 -0.30618623, %v470_v5 }
  0x72   : > { %v437_v17 = vmax.f32 %v3200_v37, %v3241_v15  ;;  %v184_v20 = vsel %vm183_vm0, %v181_v9, %v182_v10  ;;  %v185_v21 = vsel %vm183_vm0, %v182_v10, %v181_v9  ;;  %v438_v24 = vmax.f32 %v3214_v50, %v3245_v16 }
  0x73   : > { %v465_v19 = vadd.f32 %v463_v4, %v457_v7  ;;  %v466_v25 = vadd.f32 %v464_v8, %v458_v12  ;;  %v3292_v26 = vadd.f32 %v471_v6, %v463_v4  ;;  %v186_v14 = vmax.f32 %v179_v57, %v184_v20 }
  0x74   : > { %v187_v23 = vmax.f32 %v180_v58, %v185_v21  ;;  %v439_v28 = vmul.f32 -0.30618623, %v437_v17  ;;  %v440_v29 = vmul.f32 -0.30618623, %v438_v24  ;;  %v525_v37 = vsel %vm523_vm2, %v402_v18, 0  ;;  %v2630_v21 = vld [vmem:[%s3148_s7 + $0xa0] sm:$0xff] }
  0x75   : > { %v1018_v27 = vand.u32 4294901760, %v465_v19  ;;  %v1022_v15 = vand.u32 4294901760, %v466_v25  ;;  %v407_v34 = vmax.f32 %v186_v14, %v3179_v22  ;;  %v3298_v35 = vand.u32 4294901760, %v525_v37 }
  0x76   : > { %v189_v31 = vsel %vm178_vm1, %v187_v23, 0.0  ;;  %v441_v16 = vadd.f32 %v439_v28, %v3219_v56  ;;  %v442_v38 = vadd.f32 %v440_v29, %v3228_v0  ;;  %v609_v47 = vand.u32 4294901760, %v3257_v33  ;;  %v2631_v29 = vld [vmem:[%s3148_s7 + $0xa8] sm:$0xff] }
  0x77   : > { %v3300_v36 = vsub.f32 %v465_v19, %v1018_v27  ;;  %v408_v50 = vmax.f32 %v189_v31, %v3191_v30  ;;  %v3305_v39 = vpack.c.bf16 %v1022_v15, %v1018_v27  ;;  %v3307_v40 = vsub.f32 %v466_v25, %v1022_v15  ;;  %v2632_v15 = vld [vmem:[%s3148_s7 + $0xb0] sm:$0xff] }
  0x78   : > { %v409_v41 = vmul.f32 -0.30618623, %v407_v34  ;;  %v3310_v42 = vsub.f32 %v525_v37, %v3298_v35  ;;  %v449_v22 = vadd.f32 %v447_v59, %v441_v16  ;;  %v450_v46 = vadd.f32 %v448_v60, %v442_v38  ;;  %v2633_v38 = vld [vmem:[%s3148_s7 + $0xb8] sm:$0xff] }
  0x79   : > { %v410_v44 = vmul.f32 -0.30618623, %v408_v50  ;;  %2678 = vmatprep.subr.bf16.mxu1 %v3305_v39  ;;  %v621_v0 = vand.u32 4294901760, %v3282_v11  ;;  %v1100_v48 = vand.u32 4294901760, %v3300_v36  ;;  %v610_v55 = vsub.f32 %v3257_v33, %v609_v47 }
  0x7a   : > { %v417_v30 = vadd.f32 %v3208_v45, %v409_v41  ;;  %v3316_v56 = vand.u32 4294901760, %v3310_v42  ;;  %v1020_v52 = vand.u32 4294901760, %v449_v22  ;;  %v1024_v54 = vand.u32 4294901760, %v450_v46  ;;  %v2634_v41 = vld [vmem:[%s3148_s7 + $0xc0] sm:$0xff] }
  0x7b   : > { %v418_v49 = vadd.f32 %v3216_v51, %v410_v44  ;;  %v622_v59 = vsub.f32 %v3282_v11, %v621_v0  ;;  %v1101_v45 = vsub.f32 %v3300_v36, %v1100_v48  ;;  %v611_v5 = vand.u32 4294901760, %v610_v55  ;;  %v2635_v44 = vld [vmem:[%s3148_s7 + $0xc8] sm:$0xff] }
  0x7c   : > { %v529_v57 = vand.u32 4294901760, %v417_v30  ;;  %v599_v58 = vsub.f32 %v3310_v42, %v3316_v56  ;;  %v3326_v61 = vpack.c.bf16 %v1024_v54, %v1020_v52  ;;  %v3328_v62 = vsub.f32 %v449_v22, %v1020_v52 }
  0x7d   : > { %v533_v60 = vand.u32 4294901760, %v418_v49  ;;  %v3330_v63 = vsub.f32 %v450_v46, %v1024_v54  ;;  %v623_v6 = vand.u32 4294901760, %v622_v59  ;;  %v3336_v7 = vadd.f32 %v472_v13, %v464_v8 }
  0x7e   : > { %v3332_v51 = vsub.f32 %v417_v30, %v529_v57  ;;  %v3334_v4 = vand.u32 4294901760, %v599_v58  ;;  %2680 = vmatpush1.bf16.msra.mxu1 %v3326_v61  ;;  %v1112_v12 = vand.u32 4294901760, %v3307_v40  ;;  %v1106_v19 = vand.u32 4294901760, %v3328_v62  ;;  %v2636_v30 = vld [vmem:[%s3148_s7 + $0xd0] sm:$0xff]  ;;  %v3389_v58 = vld [vmem:[%s3148_s7 + $0xe0] sm:$0xff] }
  0x7f   : > { %v3338_v9 = vpack.c.bf16 %v533_v60, %v529_v57  ;;  %v3340_v10 = vsub.f32 %v418_v49, %v533_v60  ;;  %v2657_v17 = vpack.c.bf16 %v623_v6, %v611_v5  ;;  %v1118_v20 = vand.u32 4294901760, %v3330_v63  ;;  %v3384_v49 = vld [vmem:[%s3148_s7 + $0xd8] sm:$0xff] }
  0x80   : > { %v615_v18 = vand.u32 4294901760, %v3332_v51  ;;  %v1102_v8 = vand.u32 4294901760, %v1101_v45  ;;  %v1113_v13 = vsub.f32 %v3307_v40, %v1112_v12  ;;  %v2661_v25 = vpack.c.bf16 %v3282_v11, %v3257_v33 }
  0x81   : > { %2656 = vmatpush1.bf16.msra.mxu0 %v3338_v9  ;;  %v627_v24 = vand.u32 4294901760, %v3340_v10  ;;  %1092 = vmatmul.mubr.f32.vlgmr.msra.gmra.mrb[0].mxu1 %v3334_v4  ;;  %v1107_v23 = vsub.f32 %v3328_v62, %v1106_v19  ;;  %v1119_v27 = vsub.f32 %v3330_v63, %v1118_v20  ;;  %v2685_v11 = vpack.c.bf16 %v3307_v40, %v3300_v36 }
  0x82   : > { %2658 = vmatprep.subr.bf16.mxu0 %v2657_v17  ;;  %v616_v14 = vsub.f32 %v3332_v51, %v615_v18  ;;  %v1114_v28 = vand.u32 4294901760, %v1113_v13  ;;  %1182 = vmatprep.mubr.f32.mxu1 %v2988_v1  ;;  %v321_v37 = vrot.slane %v2630_v21, 1  ;;  %v2663_v16 = vpack.c.bf16 %v3340_v10, %v3332_v51  ;;  %v2639_v13 = vld [vmem:[%s3148_s7 + $0xe8] sm:$0xff] }
  0x83   : > { %v628_v33 = vsub.f32 %v3340_v10, %v627_v24  ;;  %v1108_v34 = vand.u32 4294901760, %v1107_v23  ;;  %v1120_v50 = vand.u32 4294901760, %v1119_v27  ;;  %v2687_v36 = vpack.c.bf16 %v3330_v63, %v3328_v62 }
  0x84   : > { %601 = vmatmul.mubr.f32.vlgmr.msra.gmra.mrb[0].mxu0 %v3334_v4  ;;  %v617_v31 = vand.u32 4294901760, %v616_v14  ;;  %v2681_v22 = vpack.c.bf16 %v1114_v28, %v1102_v8  ;;  %v3380_v40 = vpack.c.bf16 %v621_v0, %v609_v47  ;;  %v3386_v54 = vpack.c.bf16 %v1112_v12, %v1100_v48 }
  0x85   : > { %v629_v46 = vand.u32 4294901760, %v628_v33  ;;  %691 = vmatprep.mubr.f32.mxu0 %v2988_v1  ;;  %v2683_v52 = vpack.c.bf16 %v1120_v50, %v1108_v34  ;;  %v322_v55 = vrot.slane %v2631_v29, 1  ;;  %v335_v57 = vrot.slane %v2632_v15, 1 }
  0x86   : > { %2682 = vmatprep.subr.bf16.mxu1 %v2681_v22  ;;  %v336_v45 = vrot.slane %v2633_v38, 1  ;;  %v349_v60 = vrot.slane %v2634_v41, 1  ;;  %v350_v5 = vrot.slane %v2635_v44, 1  ;;  %v363_v6 = vrot.slane %v2636_v30, 1 }
  0x87   : > { %v2659_v59 = vpack.c.bf16 %v629_v46, %v617_v31  ;;  %2684 = vmatpush1.bf16.msra.mxu1 %v2683_v52  ;;  %v323_v47 = vsel %vm183_vm0, %v321_v37, %v322_v55  ;;  %v324_v0 = vsel %vm183_vm0, %v322_v55, %v321_v37  ;;  %v364_v48 = vrot.slane %v3384_v49, 1 }
  0x88   : > { %2686 = vmatprep.subr.bf16.mxu1 %v2685_v11  ;;  %v325_v12 = vmax.f32 %v2630_v21, %v323_v47  ;;  %v326_v17 = vmax.f32 %v2631_v29, %v324_v0  ;;  %v337_v8 = vsel %vm183_vm0, %v335_v57, %v336_v45  ;;  %v377_v14 = vrot.slane %v3389_v58, 1 }
  0x89   : > { %2660 = vmatpush1.bf16.msra.mxu0 %v2659_v59  ;;  %v338_v23 = vsel %vm183_vm0, %v336_v45, %v335_v57  ;;  %v339_v27 = vmax.f32 %v2632_v15, %v337_v8  ;;  %v351_v28 = vsel %vm183_vm0, %v349_v60, %v350_v5  ;;  %v352_v33 = vsel %vm183_vm0, %v350_v5, %v349_v60  ;;  %v2640_v60 = vld [vmem:[%s3148_s7 + $0xf0] sm:$0xff]  ;;  %v2641_v5 = vld [vmem:[%s3148_s7 + $0xf8] sm:$0xff] }
  0x8a   : > { %2662 = vmatprep.subr.bf16.mxu0 %v2661_v25  ;;  %1184 = vmatmul.mubr.f32.vlgmr.msra.gmra.mrb[0].mxu1 %v3298_v35  ;;  %v328_v21 = vsel %vm178_vm1, %v326_v17, 0.0  ;;  %v340_v11 = vmax.f32 %v2633_v38, %v338_v23  ;;  %v353_v29 = vmax.f32 %v2634_v41, %v351_v28  ;;  %v354_v37 = vmax.f32 %v2635_v44, %v352_v33 }
  0x8b   : > { %2688 = vmatpush1.bf16.msra.mxu1 %v2687_v36  ;;  %v365_v25 = vsel %vm183_vm0, %v363_v6, %v364_v48  ;;  %v477_v15 = vmax.f32 %v3268_v43, %v325_v12  ;;  %v478_v31 = vmax.f32 %v3276_v53, %v328_v21  ;;  %v378_v34 = vrot.slane %v2639_v13, 1  ;;  %1262 = vmatprep.mubr.f32.mxu1 %v2988_v1 }
  0x8c   : > { %693 = vmatmul.mubr.f32.vlgmr.msra.gmra.mrb[0].mxu0 %v3298_v35  ;;  %v342_v50 = vsel %vm178_vm1, %v340_v11, 0.0  ;;  %v356_v38 = vsel %vm178_vm1, %v354_v37, 0.0  ;;  %v367_v41 = vmax.f32 %v2636_v30, %v365_v25  ;;  %v485_v44 = vmax.f32 %v325_v12, %v339_v27  ;;  %2690 = vmatprep.subr.bf16.mxu1 %v3305_v39 }
  0x8d   : > { %2664 = vmatpush1.bf16.msra.mxu0 %v2663_v16  ;;  %771 = vmatprep.mubr.f32.mxu0 %v2988_v1  ;;  %v479_v43 = vmul.f32 -0.15309311, %v477_v15  ;;  %v480_v53 = vmul.f32 -0.15309311, %v478_v31  ;;  %v486_v22 = vmax.f32 %v328_v21, %v342_v50  ;;  %v493_v16 = vmax.f32 %v339_v27, %v353_v29 }
  0x8e   : > { %2666 = vmatprep.subr.bf16.mxu0 %v3255_v32  ;;  %v487_v46 = vmul.f32 -0.30618623, %v485_v44  ;;  %v494_v36 = vmax.f32 %v342_v50, %v356_v38  ;;  %v501_v52 = vmax.f32 %v353_v29, %v367_v41  ;;  %v366_v55 = vsel %vm183_vm0, %v364_v48, %v363_v6 }
  0x8f   : > { %v488_v30 = vmul.f32 -0.30618623, %v486_v22  ;;  %v495_v57 = vmul.f32 -0.15309311, %v493_v16  ;;  %v368_v59 = vmax.f32 %v3384_v49, %v366_v55  ;;  %v379_v45 = vsel %vm183_vm0, %v377_v14, %v378_v34 }
  0x90   : > { %v489_v47 = vadd.f32 %v487_v46, %v479_v43  ;;  %v496_v0 = vmul.f32 -0.15309311, %v494_v36  ;;  %v503_v12 = vmul.f32 -0.30618623, %v501_v52  ;;  %v380_v17 = vsel %vm183_vm0, %v378_v34, %v377_v14 }
  0x91   : > { %v490_v8 = vadd.f32 %v488_v30, %v480_v53  ;;  %v370_v23 = vsel %vm178_vm1, %v368_v59, 0.0  ;;  %v381_v6 = vmax.f32 %v3389_v58, %v379_v45  ;;  %v382_v48 = vmax.f32 %v2639_v13, %v380_v17 }
  0x92   : > { %1265 = vmatmul.mubr.f32.vlgmr.msra.gmra.mrb[0].mxu1 %v3310_v42  ;;  %v3435_v49 = vadd.f32 %v495_v57, %v489_v47  ;;  %v505_v27 = vadd.f32 %v503_v12, %v495_v57  ;;  %v391_v28 = vrot.slane %v2640_v60, 1  ;;  %v392_v33 = vrot.slane %v2641_v5, 1 }
  0x93   : > { %2692 = vmatpush1.bf16.msra.mxu1 %v3326_v61  ;;  %v498_v21 = vadd.f32 %v496_v0, %v490_v8  ;;  %v384_v14 = vsel %vm178_vm1, %v382_v48, 0.0  ;;  %v502_v11 = vmax.f32 %v356_v38, %v370_v23  ;;  %v509_v29 = vmax.f32 %v367_v41, %v381_v6  ;;  %1339 = vmatprep.mubr.f32.mxu1 %v2988_v1 }
  0x94   : > { %774 = vmatmul.mubr.f32.vlgmr.msra.gmra.mrb[0].mxu0 %v3310_v42  ;;  %v1509_v58 = vand.u32 4294901760, %v3435_v49  ;;  %v393_v13 = vsel %vm183_vm0, %v391_v28, %v392_v33  ;;  %v394_v37 = vsel %vm183_vm0, %v392_v33, %v391_v28  ;;  %v510_v25 = vmax.f32 %v370_v23, %v384_v14  ;;  %2694 = vmatprep.subr.bf16.mxu1 %v3386_v54 }
  0x95   : > { %2668 = vmatpush1.bf16.msra.mxu0 %v3338_v9  ;;  %848 = vmatprep.mubr.f32.mxu0 %v2988_v1  ;;  %v1513_v15 = vand.u32 4294901760, %v498_v21  ;;  %v395_v31 = vmax.f32 %v2640_v60, %v393_v13  ;;  %v396_v34 = vmax.f32 %v2641_v5, %v394_v37  ;;  %v504_v50 = vmul.f32 -0.30618623, %v502_v11 }
  0x96   : > { %2670 = vmatprep.subr.bf16.mxu0 %v3380_v40  ;;  %v511_v38 = vmul.f32 -0.15309311, %v509_v29  ;;  %v512_v41 = vmul.f32 -0.15309311, %v510_v25  ;;  %v3452_v44 = vadd.f32 %v479_v43, %v3292_v26  ;;  %v2671_v2 = vpack.c.bf16 %v627_v24, %v615_v18 }
  0x97   : > { %v2695_v40 = vpack.c.bf16 %v1118_v20, %v1106_v19  ;;  %v398_v22 = vsel %vm178_vm1, %v396_v34, 0.0  ;;  %v517_v16 = vmax.f32 %v381_v6, %v395_v31  ;;  %v3465_v46 = vadd.f32 %v480_v53, %v3336_v7 }
  0x98   : > { %v518_v54 = vmax.f32 %v384_v14, %v398_v22  ;;  %v1511_v26 = vand.u32 4294901760, %v3452_v44  ;;  %v506_v43 = vadd.f32 %v504_v50, %v496_v0  ;;  %v3469_v51 = vsub.f32 %v3435_v49, %v1509_v58 }
  0x99   : > { %v3471_v10 = vsub.f32 %v498_v21, %v1513_v15  ;;  %v519_v62 = vmul.f32 -0.30618623, %v517_v16  ;;  %v513_v18 = vadd.f32 %v511_v38, %v505_v27  ;;  %v1515_v3 = vand.u32 4294901760, %v3465_v46 }
  0x9a   : > { %1343 = vmatmul.mubr.f32.vlgmr.msra.gmra.mrb[0].mxu1 %v3316_v56  ;;  %v520_v63 = vmul.f32 -0.30618623, %v518_v54  ;;  %v514_v19 = vadd.f32 %v512_v41, %v506_v43  ;;  %v3478_v53 = vsub.f32 %v3452_v44, %v1511_v26  ;;  %v1591_v57 = vand.u32 4294901760, %v3469_v51 }
  0x9b   : > { %2696 = vmatpush1.bf16.msra.mxu1 %v2695_v40  ;;  %v521_v7 = vadd.f32 %v519_v62, %v511_v38  ;;  %v2002_v20 = vand.u32 4294901760, %v513_v18  ;;  %v3481_v36 = vsub.f32 %v3465_v46, %v1515_v3  ;;  %1425 = vmatprep.mubr.f32.mxu1 %v2988_v1  ;;  %v1603_v59 = vand.u32 4294901760, %v3471_v10 }
  0x9c   : > { %852 = vmatmul.mubr.f32.vlgmr.msra.gmra.mrb[0].mxu0 %v3316_v56  ;;  %v522_v24 = vadd.f32 %v520_v63, %v512_v41  ;;  %v2006_v52 = vand.u32 4294901760, %v514_v19  ;;  %2698 = vmatprep.subr.bf16.mxu1 %v3305_v39  ;;  %v3500_v8 = vpack.c.bf16 %v1513_v15, %v1509_v58  ;;  %v1592_v39 = vsub.f32 %v3469_v51, %v1591_v57 }
  0x9d   : > { %2672 = vmatpush1.bf16.msra.mxu0 %v2671_v2  ;;  %934 = vmatprep.mubr.f32.mxu0 %v2988_v1  ;;  %v2000_v55 = vand.u32 4294901760, %v521_v7  ;;  %v3485_v30 = vsub.f32 %v513_v18, %v2002_v20  ;;  %v1609_v12 = vand.u32 4294901760, %v3481_v36  ;;  %v1604_v23 = vsub.f32 %v3471_v10, %v1603_v59 }
  0x9e   : > { %2674 = vmatprep.subr.bf16.mxu0 %v3255_v32  ;;  %v2004_v45 = vand.u32 4294901760, %v522_v24  ;;  %v3490_v60 = vsub.f32 %v514_v19, %v2006_v52  ;;  %v1597_v32 = vand.u32 4294901760, %v3478_v53  ;;  %v1593_v11 = vand.u32 4294901760, %v1592_v39 }
  0x9f   : > { %v3492_v5 = vsub.f32 %v521_v7, %v2000_v55  ;;  %v2088_v47 = vand.u32 4294901760, %v3485_v30  ;;  %v1610_v14 = vsub.f32 %v3481_v36, %v1609_v12  ;;  %v1605_v29 = vand.u32 4294901760, %v1604_v23 }
  0xa0   : > { %v3495_v0 = vsub.f32 %v522_v24, %v2004_v45  ;;  %v2100_v17 = vand.u32 4294901760, %v3490_v60  ;;  %v3510_v48 = vpack.c.bf16 %v2004_v45, %v2000_v55  ;;  %v2727_v13 = vpack.c.bf16 %v2006_v52, %v2002_v20 }
  0xa1   : > { %v2082_v6 = vand.u32 4294901760, %v3492_v5  ;;  %v2089_v28 = vsub.f32 %v3485_v30, %v2088_v47  ;;  %v2703_v15 = vpack.c.bf16 %v1515_v3, %v1511_v26  ;;  %v1611_v34 = vand.u32 4294901760, %v1610_v14 }
  0xa2   : > { %1427 = vmatmul.mubr.f32.vlgmr.msra.gmra.mrb[0].mxu1 %v3298_v35  ;;  %v2094_v49 = vand.u32 4294901760, %v3495_v0  ;;  %v2101_v33 = vsub.f32 %v3490_v60, %v2100_v17  ;;  %v2705_v50 = vpack.c.bf16 %v1605_v29, %v1593_v11  ;;  %v2709_v2 = vpack.c.bf16 %v3471_v10, %v3469_v51 }
  0xa3   : > { %2700 = vmatpush1.bf16.msra.mxu1 %v3326_v61  ;;  %v2083_v27 = vsub.f32 %v3492_v5, %v2082_v6  ;;  %v1598_v61 = vsub.f32 %v3478_v53, %v1597_v32  ;;  %1501 = vmatprep.mubr.f32.mxu1 %v2988_v1  ;;  %v2090_v37 = vand.u32 4294901760, %v2089_v28  ;;  %v2733_v40 = vpack.c.bf16 %v3495_v0, %v3492_v5 }
  0xa4   : > { %936 = vmatmul.mubr.f32.vlgmr.msra.gmra.mrb[0].mxu0 %v3298_v35  ;;  %v2095_v21 = vsub.f32 %v3495_v0, %v2094_v49  ;;  %2726 = vmatprep.subr.bf16.mxu1 %v3510_v48  ;;  %v2102_v25 = vand.u32 4294901760, %v2101_v33  ;;  %v2735_v22 = vpack.c.bf16 %v3490_v60, %v3485_v30  ;;  %v2711_v16 = vpack.c.bf16 %v3481_v36, %v3478_v53 }
  0xa5   : > { %2676 = vmatpush1.bf16.msra.mxu0 %v3338_v9  ;;  %1010 = vmatprep.mubr.f32.mxu0 %v2988_v1  ;;  %v2084_v9 = vand.u32 4294901760, %v2083_v27  ;;  %v1599_v31 = vand.u32 4294901760, %v1598_v61  ;;  %v2741_v54 = vpack.c.bf16 %v2094_v49, %v2082_v6  ;;  %v2743_v46 = vpack.c.bf16 %v2100_v17, %v2088_v47 }
  0xa6   : > { %2702 = vmatprep.subr.bf16.mxu0 %v3500_v8  ;;  %v2096_v58 = vand.u32 4294901760, %v2095_v21  ;;  %v2731_v41 = vpack.c.bf16 %v2102_v25, %v2090_v37  ;;  %v2719_v26 = vpack.c.bf16 %v1609_v12, %v1597_v32 }
  0xa7   : > { %v2707_v44 = vpack.c.bf16 %v1611_v34, %v1599_v31 }
  0xa8   : > { %v2729_v38 = vpack.c.bf16 %v2096_v58, %v2084_v9 }
  0xaa   : > { %1503 = vmatmul.mubr.f32.vlgmr.msra.gmra.mrb[0].mxu1 %v3298_v35 }
  0xab   : > { %2728 = vmatpush1.bf16.msra.mxu1 %v2727_v13  ;;  %2068 = vmatprep.mubr.f32.mxu1 %v2988_v1 }
  0xac   : > { %1012 = vmatmul.mubr.f32.vlgmr.msra.gmra.mrb[0].mxu0 %v3298_v35  ;;  %2730 = vmatprep.subr.bf16.mxu1 %v2729_v38 }
  0xad   : > { %2704 = vmatpush1.bf16.msra.mxu0 %v2703_v15  ;;  %1577 = vmatprep.mubr.f32.mxu0 %v2988_v1 }
  0xae   : > { %2706 = vmatprep.subr.bf16.mxu0 %v2705_v50  ;;  %2074 = vmatmul.mubr.f32.vlgmr.msra.gmra.mrb[2].mxu1 %v3334_v4 }
  0xaf   : > { %2732 = vmatpush1.bf16.msra.mxu1 %v2731_v41  ;;  %2164 = vmatprep.mubr.f32.mxu1 %v2988_v1 }
  0xb0   : > { %1583 = vmatmul.mubr.f32.vlgmr.msra.gmra.mrb[2].mxu0 %v3334_v4  ;;  %2734 = vmatprep.subr.bf16.mxu1 %v2733_v40  ;;  %v2717_v4 = vpack.c.bf16 %v1603_v59, %v1591_v57 }
  0xb1   : > { %2708 = vmatpush1.bf16.msra.mxu0 %v2707_v44  ;;  %1673 = vmatprep.mubr.f32.mxu0 %v2988_v1 }
  0xb2   : > { %2710 = vmatprep.subr.bf16.mxu0 %v2709_v2 }
  0xb6   : > { %2166 = vmatmul.mubr.f32.vlgmr.msra.gmra.mrb[2].mxu1 %v3298_v35 }
  0xb7   : > { %2736 = vmatpush1.bf16.msra.mxu1 %v2735_v22  ;;  %2244 = vmatprep.mubr.f32.mxu1 %v2988_v1 }
  0xb8   : > { %1675 = vmatmul.mubr.f32.vlgmr.msra.gmra.mrb[2].mxu0 %v3298_v35  ;;  %2738 = vmatprep.subr.bf16.mxu1 %v3510_v48 }
  0xb9   : > { %2712 = vmatpush1.bf16.msra.mxu0 %v2711_v16  ;;  %1753 = vmatprep.mubr.f32.mxu0 %v2988_v1 }
  0xba   : > { %2714 = vmatprep.subr.bf16.mxu0 %v3500_v8 }
  0xbe   : > { %2247 = vmatmul.mubr.f32.vlgmr.msra.gmra.mrb[2].mxu1 %v3310_v42 }
  0xbf   : > { %2740 = vmatpush1.bf16.msra.mxu1 %v2727_v13  ;;  %2321 = vmatprep.mubr.f32.mxu1 %v2988_v1 }
  0xc0   : > { %1756 = vmatmul.mubr.f32.vlgmr.msra.gmra.mrb[2].mxu0 %v3310_v42  ;;  %2742 = vmatprep.subr.bf16.mxu1 %v2741_v54 }
  0xc1   : > { %2716 = vmatpush1.bf16.msra.mxu0 %v2703_v15  ;;  %1830 = vmatprep.mubr.f32.mxu0 %v2988_v1 }
  0xc2   : > { %2718 = vmatprep.subr.bf16.mxu0 %v2717_v4 }
  0xc6   : > { %2325 = vmatmul.mubr.f32.vlgmr.msra.gmra.mrb[2].mxu1 %v3316_v56 }
  0xc7   : > { %2744 = vmatpush1.bf16.msra.mxu1 %v2743_v46  ;;  %2407 = vmatprep.mubr.f32.mxu1 %v2988_v1 }
  0xc8   : > { %1834 = vmatmul.mubr.f32.vlgmr.msra.gmra.mrb[2].mxu0 %v3316_v56  ;;  %2746 = vmatprep.subr.bf16.mxu1 %v3510_v48 }
  0xc9   : > { %2720 = vmatpush1.bf16.msra.mxu0 %v2719_v26  ;;  %1916 = vmatprep.mubr.f32.mxu0 %v2988_v1 }
  0xca   : > { %2722 = vmatprep.subr.bf16.mxu0 %v3500_v8 }
  0xce   : > { %2409 = vmatmul.mubr.f32.vlgmr.msra.gmra.mrb[2].mxu1 %v3298_v35 }
  0xcf   : > { %2748 = vmatpush1.bf16.msra.mxu1 %v2727_v13  ;;  %2483 = vmatprep.mubr.f32.mxu1 %v2988_v1 }
  0xd0   : > { %1918 = vmatmul.mubr.f32.vlgmr.msra.gmra.mrb[2].mxu0 %v3298_v35 }
  0xd1   : > { %2724 = vmatpush1.bf16.msra.mxu0 %v2703_v15  ;;  %1992 = vmatprep.mubr.f32.mxu0 %v2988_v1 }
  0xd6   : > { %2485 = vmatmul.mubr.f32.vlgmr.msra.gmra.mrb[2].mxu1 %v3298_v35 }
  0xd8   : > { %1994 = vmatmul.mubr.f32.vlgmr.msra.gmra.mrb[2].mxu0 %v3298_v35 }
 0x17d   : > { %v1504_v42 = vpop.f32.mrb[0].mxu1 }
 0x17e   : > { %2643 = vst [vmem:[%s173_s23 + $0x10] sm:$0xff] %v1504_v42  ;;  %v1506_v43 = vpop.f32.mrb[1].mxu1 }
 0x17f   : > { %v1013_v56 = vpop.f32.mrb[0].mxu0  ;;  %2644 = vst [vmem:[%s173_s23 + $0x18] sm:$0xff] %v1506_v43 }
 0x180   : > { %2491 = vst [vmem:[%s173_s23] sm:$0xff] %v1013_v56  ;;  %v1015_v51 = vpop.f32.mrb[1].mxu0 }
 0x181   : > { %2642 = vst [vmem:[%s173_s23 + $0x8] sm:$0xff] %v1015_v51 }
 0x1a9   : > { %v2486_v1 = vpop.f32.mrb[2].mxu1 }
 0x1aa   : > { %2647 = vst [vmem:[%s173_s23 + $0x30] sm:$0xff] %v2486_v1  ;;  %v2488_v10 = vpop.f32.mrb[3].mxu1 }
 0x1ab   : > { %v1995_v35 = vpop.f32.mrb[2].mxu0  ;;  %2648 = vst [vmem:[%s173_s23 + $0x38] sm:$0xff] %v2488_v10 }
 0x1ac   : > { %2645 = vst [vmem:[%s173_s23 + $0x20] sm:$0xff] %v1995_v35  ;;  %v1997_v62 = vpop.f32.mrb[3].mxu0 }
 0x1ad   : > { %2646 = vst [vmem:[%s173_s23 + $0x28] sm:$0xff] %v1997_v62 }
 0x1ae   : > { %2924 = shalt.err (!%p2921_p13)
}
 0x1af   : > { %s2925_s19 = scalar_lea.hbm %s3591_s8, 1024  ;;  %s2929_s4 = scalar_lea.hbm %s3637_s2, 2048 }
 0x1b0   : > { %p2926_p7 = scmp.ne.s32.totalorder %s3591_s8, %s2925_s19  ;;  %p2930_p1 = scmp.lt.u32.totalorder %s3591_s8, %s3637_s2 }
 0x1b1   : > { %p2931_p11 = scmp.lt.u32.totalorder %s2929_s4, %s2925_s19  ;;  %p2933_p9 = scmp.lt.u32.totalorder %s2925_s19, %s3591_s8 }
 0x1b2   : > { %p2927_p3 = pnand %p2926_p7, %p3656_p10 }
 0x1b3   : > { %p2932_p8 = por %p2931_p11, %p2930_p1 }
 0x1b4   : > { %p2928_p12 = pneg %p2927_p3 }
 0x1b5   : > { %p2934_p2 = por %p2933_p9, %p2932_p8 }
 0x1b7   : > { %p2935_p4 = pnand %p2934_p2, %p2928_p12 }
 0x1b9   : > { %2938 = shalt.err (!%p2935_p4)
}
 0x1ba   : > { %s2990_s7 = smov 128   ;;  %s2991_s20 = smov 256  }
 0x1bb   : > { %s2992_s23 = smov 8  }
 0x1bc   : > { %2795 = dma.vmem_to_hbm [thread:$0]  (%p3656_p10), %s3586_s28, 1024, %s3591_s8, %s2507_s14, %s2990_s7, %s2991_s20, %s2992_s23  }
 0x1bd PF: > { %s2534_s30 = sand.u32 1, %s2969_s9   ;;  %p3657_p5 = scmp.ne.s32.totalorder %s3646_s22, 0 }
 0x1be   : > { %p3658_p0 = scmp.ge.s32.totalorder %s2981_s12, 2  ;;  %s2535_s5 = scalar_lea.sflag [#allocation5], %s2534_s30 }
 0x1c0   : > { %p2806_p6 = pnand %p3658_p0, %p3657_p5 }
 0x1c2   : > { %2964 = dma.done.wait (!%p2806_p6), %s2535_s5, 1024  }
 0x1c3   : > { %2966 = vsyncadd (!%p2806_p6), %s2535_s5, 4294966272  ;;  %p16_p13 = scmp.ge.s32.totalorder %s3033_s15, 4   ;;  %s3659_s9 = smov %s2973_s10 }
 0x1c4   : > { %s3660_s10 = smov %s2977_s11  ;;  %s3661_s11 = smov %s3045_s18 }
 0x1c5   : > { %s3662_s12 = smov %s3033_s15  ;;  %18 = sbr.rel (!%p16_p13) target bundleno = 6 (0x6), region = 114 }
 0x1cc   :  { %2540 = vsyncpa [#allocation4], 1 }
 0x1cd   :  { %2542 = vsyncpa [#allocation4 + $0x1], 1 }
 0x1ce   :  { %2543 = vsyncpa [#allocation7], 1 }
 0x1cf   :  { %2544 = vsyncpa [#allocation5], 1 }
 0x1d0   :  { %2546 = vsyncpa [#allocation5 + $0x1], 1 }

</bundles_post_ra>
